<compile_context>
chip_gen: v7x
topology: tpu7x:2x2x1
jax: 0.10.0
libtpu: 0.0.40
codegen_flags: <defaults>
</compile_context>

<pallas_src>
import functools

import jax
import jax.numpy as jnp
from jax.experimental import pallas as pl
from jax.experimental.pallas import tpu as pltpu


# ----------------------------- Pallas kernels ------------------------------ #

def conv_relu_pool_kernel(xs_ref, w_ref, b_ref, o_ref, *, pool_max, p_sz, bb):
    """Fused 3x3 conv (pad=1) + bias + ReLU + 2x2/stride-2 pool for `bb` images.

    xs_ref : (bb, 4*P, 9*Cin) bf16  im2col taps; per image rows = quad*P + p
    w_ref  : (9*Cin, Cout)    bf16  tap-major conv weights
    b_ref  : (1, Cout)        f32   bias
    o_ref  : (bb, P, Cout)    bf16  pooled output (row-major over (H/2, W/2))
    """
    cout = o_ref.shape[-1]
    x = xs_ref[...]                                   # (bb, 4P, 9Cin) bf16
    lhs = x.reshape(bb * 4 * p_sz, x.shape[-1])       # free: 4P is a multiple of 16

    # Single bf16 MXU matmul per block, f32 accumulation (no scratch round-trip).
    acc = jnp.dot(lhs, w_ref[...], preferred_element_type=jnp.float32)  # (bb*4P, Cout)
    acc = acc.reshape(bb, 4, p_sz, cout)              # free: P is a multiple of 8

    bias = b_ref[...]                                 # (1, Cout) f32, broadcast

    def quad(k):                                      # bias + ReLU per pooling quad
        return jnp.maximum(acc[:, k] + bias, 0.0)     # (bb, P, Cout) f32

    # Incremental 2x2 pooling reduction (<= 2 live (bb, P, Cout) tiles).
    pooled = quad(0)
    if pool_max:                                      # MaxPool2d(2, 2)
        pooled = jnp.maximum(pooled, quad(1))
        pooled = jnp.maximum(pooled, quad(2))
        pooled = jnp.maximum(pooled, quad(3))
    else:                                             # AvgPool2d(2, 2)
        pooled = pooled + quad(1)
        pooled = pooled + quad(2)
        pooled = pooled + quad(3)
        pooled = pooled * 0.25
    o_ref[...] = pooled.astype(o_ref.dtype)


def mlp_kernel(x_ref, w1_ref, b1_ref, w2_ref, b2_ref, o_ref):
    """fc1 + ReLU + fc2 for the whole (small) batch; bf16 operands, f32 accum/bias."""
    h = jnp.dot(x_ref[...], w1_ref[...],
                preferred_element_type=jnp.float32) + b1_ref[...]
    h = jnp.maximum(h, 0.0)
    o_ref[...] = (jnp.dot(h.astype(jnp.bfloat16), w2_ref[...],
                          preferred_element_type=jnp.float32) + b2_ref[...]
                  ).astype(o_ref.dtype)


# ------------------------------- Wrappers ---------------------------------- #

def _im2col_quads(x_nhwc):
    """(N,H,W,C) bf16 -> (N, 4*P, 9*C) bf16 tap matrix for 3x3/pad=1 conv at 2x2-pool
    positions.  Rows: [quad*P + (i*Wo + j)], quad = 2*a + b; cols: [(3*ky+kx)*C + cin].
    Value = xpad[n, 2*i + a + ky, 2*j + b + kx, cin].  (Pure XLA glue on bf16 data.)
    """
    n, h, w, c = x_nhwc.shape
    ho, wo = h // 2, w // 2
    xpad = jnp.pad(x_nhwc, ((0, 0), (1, 1), (1, 1), (0, 0)))
    phase = {}
    for p in range(4):
        for q in range(4):
            s = xpad[:, p:p + 2 * ho:2, q:q + 2 * wo:2, :]        # (N, Ho, Wo, C)
            phase[(p, q)] = s.reshape(n, ho * wo, c)
    quads = []
    for a in range(2):
        for b in range(2):
            taps = [phase[(a + ky, b + kx)] for ky in range(3) for kx in range(3)]
            quads.append(jnp.concatenate(taps, axis=-1))          # (N, P, 9C)
    return jnp.concatenate(quads, axis=1)                         # (N, 4P, 9C)


def conv_relu_pool(x_nhwc, w9, b2, *, pool_max):
    """x_nhwc: (N,H,W,Cin); w9: (9*Cin, Cout) bf16 tap-major weights; b2: (1, Cout) f32."""
    n, h, w, cin = x_nhwc.shape
    ho, wo = h // 2, w // 2
    p_sz = ho * wo
    cout = w9.shape[1]
    xs = _im2col_quads(x_nhwc.astype(jnp.bfloat16))               # (N, 4P, 9Cin) bf16

    # Batch blocking: 2 "parallel" blocks (bb images each) so both v7x TensorCores get
    # work while M = bb*4P stays large; on v5e/v6e the 2nd step is negligible overhead.
    if n >= 2 and n % 2 == 0:
        nblk, bb = 2, n // 2
    else:
        nblk, bb = n, 1

    out = pl.pallas_call(
        functools.partial(conv_relu_pool_kernel, pool_max=pool_max, p_sz=p_sz, bb=bb),
        out_shape=jax.ShapeDtypeStruct((n, p_sz, cout), jnp.bfloat16),
        grid=(nblk,),
        in_specs=[
            pl.BlockSpec((bb, 4 * p_sz, 9 * cin), lambda i: (i, 0, 0)),
            pl.BlockSpec((9 * cin, cout), lambda i: (0, 0)),
            pl.BlockSpec((1, cout), lambda i: (0, 0)),
        ],
        out_specs=pl.BlockSpec((bb, p_sz, cout), lambda i: (i, 0, 0)),
        compiler_params=pltpu.CompilerParams(
            dimension_semantics=("parallel",),
            vmem_limit_bytes=32 * 1024 * 1024,   # v5e scoped default is ~16 MiB
        ),
    )(xs, w9, b2)
    return out.reshape(n, ho, wo, cout)                           # NHWC pooled, bf16


def mlp_head(x, w1p, b1, w2t, b2):
    """x: (N, 1024) bf16; w1p: (1024, 64) bf16 permuted fc1; w2t: (64, 10) bf16."""
    n = x.shape[0]
    vspec = pl.BlockSpec(memory_space=pltpu.MemorySpace.VMEM)
    return pl.pallas_call(
        mlp_kernel,
        out_shape=jax.ShapeDtypeStruct((n, w2t.shape[1]), jnp.float32),
        in_specs=[vspec, vspec, vspec, vspec, vspec],
        out_specs=vspec,
    )(x, w1p, b1, w2t, b2)


def cnn_forward(x_nchw, p):
    x = jnp.transpose(x_nchw, (0, 2, 3, 1)).astype(jnp.bfloat16)  # NCHW -> NHWC, bf16
    x = conv_relu_pool(x, p["w1"], p["b1"], pool_max=True)        # conv1+relu+maxpool
    x = conv_relu_pool(x, p["w2"], p["b2"], pool_max=False)       # conv2+relu+avgpool
    x = conv_relu_pool(x, p["w3"], p["b3"], pool_max=True)        # conv3+relu+maxpool
    n = x.shape[0]
    # fc1 weights were pre-permuted (prep_params) to consume the (spatial, channel)
    # flatten order, so this contiguous reshape matches torch's `x.view(-1, 64*4*4)`
    # (NCHW) semantics without any runtime transpose.
    x = x.reshape(n, 4 * 4 * 64)
    return mlp_head(x, p["wf1"], p["bf1"], p["wf2"], p["bf2"])


# --------------------- Parameter init / one-time re-layout ------------------ #

def init_params(key):
    """PyTorch-layout parameters (Conv2d: (Cout,Cin,3,3); Linear: (out,in))."""
    ks = jax.random.split(key, 10)

    def w(k, shape):
        return (0.05 * jax.random.normal(k, shape)).astype(jnp.float32)

    c1, c2, c3 = 32, 64, 64   # out_channels3=64 keeps the reference forward consistent
    return {
        "w_c1": w(ks[0], (c1, 3, 3, 3)),    "b_c1": w(ks[1], (c1,)),
        "w_c2": w(ks[2], (c2, c1, 3, 3)),   "b_c2": w(ks[3], (c2,)),
        "w_c3": w(ks[4], (c3, c2, 3, 3)),   "b_c3": w(ks[5], (c3,)),
        "w_f1": w(ks[6], (64, c3 * 4 * 4)), "b_f1": w(ks[7], (64,)),
        "w_f2": w(ks[8], (10, 64)),         "b_f2": w(ks[9], (10,)),
    }


def prep_params(params):
    """One-time weight re-layout + bf16 cast (done OUTSIDE the jitted forward)."""
    def conv_w(w_pt):
        cout, cin = w_pt.shape[0], w_pt.shape[1]
        # (Cout,Cin,ky,kx) -> (ky,kx,Cin,Cout) -> (9*Cin, Cout); row = (3*ky+kx)*Cin+cin
        return jnp.transpose(w_pt, (2, 3, 1, 0)).reshape(9 * cin, cout).astype(jnp.bfloat16)

    # fc1: torch flattens NCHW (f = c*16 + p); the kernel flattens (p, c) -> g = p*64 + c.
    # Permute rows once so that  flat_pc @ w1p  ==  flat_nchw @ w_f1.T .
    w_f1 = params["w_f1"]                                         # (64_out, 1024_in)
    w1p = jnp.transpose(w_f1.reshape(64, 64, 16), (2, 1, 0)).reshape(16 * 64, 64)

    f32 = jnp.float32
    return {
        "w1": conv_w(params["w_c1"]), "b1": params["b_c1"].reshape(1, -1).astype(f32),
        "w2": conv_w(params["w_c2"]), "b2": params["b_c2"].reshape(1, -1).astype(f32),
        "w3": conv_w(params["w_c3"]), "b3": params["b_c3"].reshape(1, -1).astype(f32),
        "wf1": w1p.astype(jnp.bfloat16),
        "bf1": params["b_f1"].reshape(1, -1).astype(f32),
        "wf2": params["w_f2"].T.astype(jnp.bfloat16),
        "bf2": params["b_f2"].reshape(1, -1).astype(f32),
    }


if __name__ == "__main__":
    key = jax.random.PRNGKey(0)
    pkey, xkey = jax.random.split(key)
    params = prep_params(init_params(pkey))   # weight re-layout/bf16 cast once, outside jit
    # The forward implies 3-channel 32x32 input (three /2 pools -> 4x4 before flatten).
    x = jax.random.normal(xkey, (2, 3, 32, 32), dtype=jnp.float32)   # NCHW like PyTorch
    out = jax.jit(cnn_forward)(x, params)
    out = jax.block_until_ready(out)
    assert out.shape == (2, 10) and out.dtype == jnp.float32
    print("KERNEL_OK")
</pallas_src>

<mosaic_0001>
module attributes {stable_mosaic.version = 11 : i64} {
  func.func @conv_relu_pool_kernel(%arg0: i32, %arg1: memref<1x1024x27xbf16, #tpu.memory_space<vmem>>, %arg2: memref<27x32xbf16, #tpu.memory_space<vmem>>, %arg3: memref<1x32xf32, #tpu.memory_space<vmem>>, %arg4: memref<1x256x32xbf16, #tpu.memory_space<vmem>>) attributes {dimension_semantics = [#tpu.dimension_semantics<parallel>], iteration_bounds = array<i64: 2>, scalar_prefetch = 0 : i64, scratch_operands = 0 : i64, tpu.core_type = #tpu.core_type<tc>, window_params = [{transform_indices = @transform_0, window_bounds = array<i64: 1, 1024, 27>}, {pipeline_mode = #tpu.pipeline_mode<synchronous>, transform_indices = @transform_1, window_bounds = array<i64: 27, 32>}, {pipeline_mode = #tpu.pipeline_mode<synchronous>, transform_indices = @transform_2, window_bounds = array<i64: 1, 32>}, {transform_indices = @transform_3, window_bounds = array<i64: 1, 256, 32>}]} {
    %c0 = arith.constant 0 : index
    %c0_0 = arith.constant 0 : index
    %c0_1 = arith.constant 0 : index
    %0 = vector.load %arg1[%c0, %c0_0, %c0_1] : memref<1x1024x27xbf16, #tpu.memory_space<vmem>>, vector<1x1024x27xbf16>
    %1 = vector.shape_cast %0 : vector<1x1024x27xbf16> to vector<1024x27xbf16>
    %c0_2 = arith.constant 0 : index
    %c0_3 = arith.constant 0 : index
    %2 = vector.load %arg2[%c0_2, %c0_3] : memref<27x32xbf16, #tpu.memory_space<vmem>>, vector<27x32xbf16>
    %cst = arith.constant dense<0.000000e+00> : vector<1024x32xf32>
    %3 = tpu.matmul %1, %2, %cst {dimension_numbers = #tpu.dot_dimension_numbers<[1], [0], [0], [1], [0, 0, 1, 1], [], []>} : vector<1024x27xbf16>, vector<27x32xbf16>, vector<1024x32xf32> -> vector<1024x32xf32>
    %4 = vector.shape_cast %3 : vector<1024x32xf32> to vector<1x4x256x32xf32>
    %c0_4 = arith.constant 0 : index
    %c0_5 = arith.constant 0 : index
    %5 = vector.load %arg3[%c0_4, %c0_5] : memref<1x32xf32, #tpu.memory_space<vmem>>, vector<1x32xf32>
    %6 = vector.extract_strided_slice %4 {offsets = [0, 0, 0, 0], sizes = [1, 1, 256, 32], strides = [1, 1, 1, 1]} : vector<1x4x256x32xf32> to vector<1x1x256x32xf32>
    %7 = vector.shape_cast %6 : vector<1x1x256x32xf32> to vector<1x256x32xf32>
    %8 = vector.shape_cast %5 : vector<1x32xf32> to vector<1x1x32xf32>
    %9 = vector.broadcast %8 : vector<1x1x32xf32> to vector<1x256x32xf32>
    %10 = arith.addf %7, %9 : vector<1x256x32xf32>
    %cst_6 = arith.constant 0.000000e+00 : f32
    %11 = vector.broadcast %cst_6 : f32 to vector<1x256x32xf32>
    %12 = arith.maximumf %10, %11 : vector<1x256x32xf32>
    %13 = vector.extract_strided_slice %4 {offsets = [0, 1, 0, 0], sizes = [1, 1, 256, 32], strides = [1, 1, 1, 1]} : vector<1x4x256x32xf32> to vector<1x1x256x32xf32>
    %14 = vector.shape_cast %13 : vector<1x1x256x32xf32> to vector<1x256x32xf32>
    %15 = vector.shape_cast %5 : vector<1x32xf32> to vector<1x1x32xf32>
    %16 = vector.broadcast %15 : vector<1x1x32xf32> to vector<1x256x32xf32>
    %17 = arith.addf %14, %16 : vector<1x256x32xf32>
    %cst_7 = arith.constant 0.000000e+00 : f32
    %18 = vector.broadcast %cst_7 : f32 to vector<1x256x32xf32>
    %19 = arith.maximumf %17, %18 : vector<1x256x32xf32>
    %20 = arith.maximumf %12, %19 : vector<1x256x32xf32>
    %21 = vector.extract_strided_slice %4 {offsets = [0, 2, 0, 0], sizes = [1, 1, 256, 32], strides = [1, 1, 1, 1]} : vector<1x4x256x32xf32> to vector<1x1x256x32xf32>
    %22 = vector.shape_cast %21 : vector<1x1x256x32xf32> to vector<1x256x32xf32>
    %23 = vector.shape_cast %5 : vector<1x32xf32> to vector<1x1x32xf32>
    %24 = vector.broadcast %23 : vector<1x1x32xf32> to vector<1x256x32xf32>
    %25 = arith.addf %22, %24 : vector<1x256x32xf32>
    %cst_8 = arith.constant 0.000000e+00 : f32
    %26 = vector.broadcast %cst_8 : f32 to vector<1x256x32xf32>
    %27 = arith.maximumf %25, %26 : vector<1x256x32xf32>
    %28 = arith.maximumf %20, %27 : vector<1x256x32xf32>
    %29 = vector.extract_strided_slice %4 {offsets = [0, 3, 0, 0], sizes = [1, 1, 256, 32], strides = [1, 1, 1, 1]} : vector<1x4x256x32xf32> to vector<1x1x256x32xf32>
    %30 = vector.shape_cast %29 : vector<1x1x256x32xf32> to vector<1x256x32xf32>
    %31 = vector.shape_cast %5 : vector<1x32xf32> to vector<1x1x32xf32>
    %32 = vector.broadcast %31 : vector<1x1x32xf32> to vector<1x256x32xf32>
    %33 = arith.addf %30, %32 : vector<1x256x32xf32>
    %cst_9 = arith.constant 0.000000e+00 : f32
    %34 = vector.broadcast %cst_9 : f32 to vector<1x256x32xf32>
    %35 = arith.maximumf %33, %34 : vector<1x256x32xf32>
    %36 = arith.maximumf %28, %35 : vector<1x256x32xf32>
    %37 = arith.truncf %36 : vector<1x256x32xf32> to vector<1x256x32xbf16>
    %c0_10 = arith.constant 0 : index
    %c0_11 = arith.constant 0 : index
    %c0_12 = arith.constant 0 : index
    %38 = vector.load %arg4[%c0_10, %c0_11, %c0_12] : memref<1x256x32xbf16, #tpu.memory_space<vmem>>, vector<1x256x32xbf16>
    tpu.vector_store %arg4[%c0_10, %c0_11, %c0_12], %37 {strides = array<i32>} : memref<1x256x32xbf16, #tpu.memory_space<vmem>>, vector<1x256x32xbf16>,
    return
  }
  func.func @transform_0(%arg0: i32) -> (i32, i32, i32) {
    %c0_i32 = arith.constant 0 : i32
    %c0_i32_0 = arith.constant 0 : i32
    %c0_i32_1 = arith.constant 0 : i32
    return %arg0, %c0_i32, %c0_i32_0 : i32, i32, i32
  }
  func.func @transform_1(%arg0: i32) -> (i32, i32) {
    %c0_i32 = arith.constant 0 : i32
    %c0_i32_0 = arith.constant 0 : i32
    %c0_i32_1 = arith.constant 0 : i32
    return %c0_i32, %c0_i32_0 : i32, i32
  }
  func.func @transform_2(%arg0: i32) -> (i32, i32) {
    %c0_i32 = arith.constant 0 : i32
    %c0_i32_0 = arith.constant 0 : i32
    %c0_i32_1 = arith.constant 0 : i32
    return %c0_i32, %c0_i32_0 : i32, i32
  }
  func.func @transform_3(%arg0: i32) -> (i32, i32, i32) {
    %c0_i32 = arith.constant 0 : i32
    %c0_i32_0 = arith.constant 0 : i32
    %c0_i32_1 = arith.constant 0 : i32
    return %arg0, %c0_i32, %c0_i32_0 : i32, i32, i32
  }
}

module attributes {stable_mosaic.version = 11 : i64} {
  func.func @conv_relu_pool_kernel(%arg0: i32, %arg1: memref<1x256x288xbf16, #tpu.memory_space<vmem>>, %arg2: memref<288x64xbf16, #tpu.memory_space<vmem>>, %arg3: memref<1x64xf32, #tpu.memory_space<vmem>>, %arg4: memref<1x64x64xbf16, #tpu.memory_space<vmem>>) attributes {dimension_semantics = [#tpu.dimension_semantics<parallel>], iteration_bounds = array<i64: 2>, scalar_prefetch = 0 : i64, scratch_operands = 0 : i64, tpu.core_type = #tpu.core_type<tc>, window_params = [{transform_indices = @transform_0, window_bounds = array<i64: 1, 256, 288>}, {pipeline_mode = #tpu.pipeline_mode<synchronous>, transform_indices = @transform_1, window_bounds = array<i64: 288, 64>}, {pipeline_mode = #tpu.pipeline_mode<synchronous>, transform_indices = @transform_2, window_bounds = array<i64: 1, 64>}, {transform_indices = @transform_3, window_bounds = array<i64: 1, 64, 64>}]} {
    %c0 = arith.constant 0 : index
    %c0_0 = arith.constant 0 : index
    %c0_1 = arith.constant 0 : index
    %0 = vector.load %arg1[%c0, %c0_0, %c0_1] : memref<1x256x288xbf16, #tpu.memory_space<vmem>>, vector<1x256x288xbf16>
    %1 = vector.shape_cast %0 : vector<1x256x288xbf16> to vector<256x288xbf16>
    %c0_2 = arith.constant 0 : index
    %c0_3 = arith.constant 0 : index
    %2 = vector.load %arg2[%c0_2, %c0_3] : memref<288x64xbf16, #tpu.memory_space<vmem>>, vector<288x64xbf16>
    %cst = arith.constant dense<0.000000e+00> : vector<256x64xf32>
    %3 = tpu.matmul %1, %2, %cst {dimension_numbers = #tpu.dot_dimension_numbers<[1], [0], [0], [1], [0, 0, 1, 1], [], []>} : vector<256x288xbf16>, vector<288x64xbf16>, vector<256x64xf32> -> vector<256x64xf32>
    %4 = vector.shape_cast %3 : vector<256x64xf32> to vector<1x4x64x64xf32>
    %c0_4 = arith.constant 0 : index
    %c0_5 = arith.constant 0 : index
    %5 = vector.load %arg3[%c0_4, %c0_5] : memref<1x64xf32, #tpu.memory_space<vmem>>, vector<1x64xf32>
    %6 = vector.extract_strided_slice %4 {offsets = [0, 0, 0, 0], sizes = [1, 1, 64, 64], strides = [1, 1, 1, 1]} : vector<1x4x64x64xf32> to vector<1x1x64x64xf32>
    %7 = vector.shape_cast %6 : vector<1x1x64x64xf32> to vector<1x64x64xf32>
    %8 = vector.shape_cast %5 : vector<1x64xf32> to vector<1x1x64xf32>
    %9 = vector.broadcast %8 : vector<1x1x64xf32> to vector<1x64x64xf32>
    %10 = arith.addf %7, %9 : vector<1x64x64xf32>
    %cst_6 = arith.constant 0.000000e+00 : f32
    %11 = vector.broadcast %cst_6 : f32 to vector<1x64x64xf32>
    %12 = arith.maximumf %10, %11 : vector<1x64x64xf32>
    %13 = vector.extract_strided_slice %4 {offsets = [0, 1, 0, 0], sizes = [1, 1, 64, 64], strides = [1, 1, 1, 1]} : vector<1x4x64x64xf32> to vector<1x1x64x64xf32>
    %14 = vector.shape_cast %13 : vector<1x1x64x64xf32> to vector<1x64x64xf32>
    %15 = vector.shape_cast %5 : vector<1x64xf32> to vector<1x1x64xf32>
    %16 = vector.broadcast %15 : vector<1x1x64xf32> to vector<1x64x64xf32>
    %17 = arith.addf %14, %16 : vector<1x64x64xf32>
    %cst_7 = arith.constant 0.000000e+00 : f32
    %18 = vector.broadcast %cst_7 : f32 to vector<1x64x64xf32>
    %19 = arith.maximumf %17, %18 : vector<1x64x64xf32>
    %20 = arith.addf %12, %19 : vector<1x64x64xf32>
    %21 = vector.extract_strided_slice %4 {offsets = [0, 2, 0, 0], sizes = [1, 1, 64, 64], strides = [1, 1, 1, 1]} : vector<1x4x64x64xf32> to vector<1x1x64x64xf32>
    %22 = vector.shape_cast %21 : vector<1x1x64x64xf32> to vector<1x64x64xf32>
    %23 = vector.shape_cast %5 : vector<1x64xf32> to vector<1x1x64xf32>
    %24 = vector.broadcast %23 : vector<1x1x64xf32> to vector<1x64x64xf32>
    %25 = arith.addf %22, %24 : vector<1x64x64xf32>
    %cst_8 = arith.constant 0.000000e+00 : f32
    %26 = vector.broadcast %cst_8 : f32 to vector<1x64x64xf32>
    %27 = arith.maximumf %25, %26 : vector<1x64x64xf32>
    %28 = arith.addf %20, %27 : vector<1x64x64xf32>
    %29 = vector.extract_strided_slice %4 {offsets = [0, 3, 0, 0], sizes = [1, 1, 64, 64], strides = [1, 1, 1, 1]} : vector<1x4x64x64xf32> to vector<1x1x64x64xf32>
    %30 = vector.shape_cast %29 : vector<1x1x64x64xf32> to vector<1x64x64xf32>
    %31 = vector.shape_cast %5 : vector<1x64xf32> to vector<1x1x64xf32>
    %32 = vector.broadcast %31 : vector<1x1x64xf32> to vector<1x64x64xf32>
    %33 = arith.addf %30, %32 : vector<1x64x64xf32>
    %cst_9 = arith.constant 0.000000e+00 : f32
    %34 = vector.broadcast %cst_9 : f32 to vector<1x64x64xf32>
    %35 = arith.maximumf %33, %34 : vector<1x64x64xf32>
    %36 = arith.addf %28, %35 : vector<1x64x64xf32>
    %cst_10 = arith.constant 2.500000e-01 : f32
    %37 = vector.broadcast %cst_10 : f32 to vector<1x64x64xf32>
    %38 = arith.mulf %36, %37 : vector<1x64x64xf32>
    %39 = arith.truncf %38 : vector<1x64x64xf32> to vector<1x64x64xbf16>
    %c0_11 = arith.constant 0 : index
    %c0_12 = arith.constant 0 : index
    %c0_13 = arith.constant 0 : index
    %40 = vector.load %arg4[%c0_11, %c0_12, %c0_13] : memref<1x64x64xbf16, #tpu.memory_space<vmem>>, vector<1x64x64xbf16>
    tpu.vector_store %arg4[%c0_11, %c0_12, %c0_13], %39 {strides = array<i32>} : memref<1x64x64xbf16, #tpu.memory_space<vmem>>, vector<1x64x64xbf16>,
    return
  }
  func.func @transform_0(%arg0: i32) -> (i32, i32, i32) {
    %c0_i32 = arith.constant 0 : i32
    %c0_i32_0 = arith.constant 0 : i32
    %c0_i32_1 = arith.constant 0 : i32
    return %arg0, %c0_i32, %c0_i32_0 : i32, i32, i32
  }
  func.func @transform_1(%arg0: i32) -> (i32, i32) {
    %c0_i32 = arith.constant 0 : i32
    %c0_i32_0 = arith.constant 0 : i32
    %c0_i32_1 = arith.constant 0 : i32
    return %c0_i32, %c0_i32_0 : i32, i32
  }
  func.func @transform_2(%arg0: i32) -> (i32, i32) {
    %c0_i32 = arith.constant 0 : i32
    %c0_i32_0 = arith.constant 0 : i32
    %c0_i32_1 = arith.constant 0 : i32
    return %c0_i32, %c0_i32_0 : i32, i32
  }
  func.func @transform_3(%arg0: i32) -> (i32, i32, i32) {
    %c0_i32 = arith.constant 0 : i32
    %c0_i32_0 = arith.constant 0 : i32
    %c0_i32_1 = arith.constant 0 : i32
    return %arg0, %c0_i32, %c0_i32_0 : i32, i32, i32
  }
}

module attributes {stable_mosaic.version = 11 : i64} {
  func.func @mlp_kernel(%arg0: memref<2x1024xbf16, #tpu.memory_space<vmem>>, %arg1: memref<1024x64xbf16, #tpu.memory_space<vmem>>, %arg2: memref<1x64xf32, #tpu.memory_space<vmem>>, %arg3: memref<64x10xbf16, #tpu.memory_space<vmem>>, %arg4: memref<1x10xf32, #tpu.memory_space<vmem>>, %arg5: memref<2x10xf32, #tpu.memory_space<vmem>>) attributes {dimension_semantics = [], scalar_prefetch = 0 : i64, scratch_operands = 0 : i64, tpu.core_type = #tpu.core_type<tc>} {
    %c0 = arith.constant 0 : index
    %c0_0 = arith.constant 0 : index
    %0 = vector.load %arg0[%c0, %c0_0] : memref<2x1024xbf16, #tpu.memory_space<vmem>>, vector<2x1024xbf16>
    %c0_1 = arith.constant 0 : index
    %c0_2 = arith.constant 0 : index
    %1 = vector.load %arg1[%c0_1, %c0_2] : memref<1024x64xbf16, #tpu.memory_space<vmem>>, vector<1024x64xbf16>
    %cst = arith.constant dense<0.000000e+00> : vector<2x64xf32>
    %2 = tpu.matmul %0, %1, %cst {dimension_numbers = #tpu.dot_dimension_numbers<[1], [0], [0], [1], [0, 0, 1, 1], [], []>} : vector<2x1024xbf16>, vector<1024x64xbf16>, vector<2x64xf32> -> vector<2x64xf32>
    %c0_3 = arith.constant 0 : index
    %c0_4 = arith.constant 0 : index
    %3 = vector.load %arg2[%c0_3, %c0_4] : memref<1x64xf32, #tpu.memory_space<vmem>>, vector<1x64xf32>
    %4 = vector.broadcast %3 : vector<1x64xf32> to vector<2x64xf32>
    %5 = arith.addf %2, %4 : vector<2x64xf32>
    %cst_5 = arith.constant 0.000000e+00 : f32
    %6 = vector.broadcast %cst_5 : f32 to vector<2x64xf32>
    %7 = arith.maximumf %5, %6 : vector<2x64xf32>
    %8 = arith.truncf %7 : vector<2x64xf32> to vector<2x64xbf16>
    %c0_6 = arith.constant 0 : index
    %c0_7 = arith.constant 0 : index
    %9 = vector.load %arg3[%c0_6, %c0_7] : memref<64x10xbf16, #tpu.memory_space<vmem>>, vector<64x10xbf16>
    %cst_8 = arith.constant dense<0.000000e+00> : vector<2x10xf32>
    %10 = tpu.matmul %8, %9, %cst_8 {dimension_numbers = #tpu.dot_dimension_numbers<[1], [0], [0], [1], [0, 0, 1, 1], [], []>} : vector<2x64xbf16>, vector<64x10xbf16>, vector<2x10xf32> -> vector<2x10xf32>
    %c0_9 = arith.constant 0 : index
    %c0_10 = arith.constant 0 : index
    %11 = vector.load %arg4[%c0_9, %c0_10] : memref<1x10xf32, #tpu.memory_space<vmem>>, vector<1x10xf32>
    %12 = vector.broadcast %11 : vector<1x10xf32> to vector<2x10xf32>
    %13 = arith.addf %10, %12 : vector<2x10xf32>
    %c0_11 = arith.constant 0 : index
    %c0_12 = arith.constant 0 : index
    %14 = vector.load %arg5[%c0_11, %c0_12] : memref<2x10xf32, #tpu.memory_space<vmem>>, vector<2x10xf32>
    tpu.vector_store %arg5[%c0_11, %c0_12], %13 {strides = array<i32>} : memref<2x10xf32, #tpu.memory_space<vmem>>, vector<2x10xf32>,
    return
  }
}

module attributes {stable_mosaic.version = 11 : i64} {
  func.func @conv_relu_pool_kernel(%arg0: i32, %arg1: memref<1x64x576xbf16, #tpu.memory_space<vmem>>, %arg2: memref<576x64xbf16, #tpu.memory_space<vmem>>, %arg3: memref<1x64xf32, #tpu.memory_space<vmem>>, %arg4: memref<1x16x64xbf16, #tpu.memory_space<vmem>>) attributes {dimension_semantics = [#tpu.dimension_semantics<parallel>], iteration_bounds = array<i64: 2>, scalar_prefetch = 0 : i64, scratch_operands = 0 : i64, tpu.core_type = #tpu.core_type<tc>, window_params = [{transform_indices = @transform_0, window_bounds = array<i64: 1, 64, 576>}, {pipeline_mode = #tpu.pipeline_mode<synchronous>, transform_indices = @transform_1, window_bounds = array<i64: 576, 64>}, {pipeline_mode = #tpu.pipeline_mode<synchronous>, transform_indices = @transform_2, window_bounds = array<i64: 1, 64>}, {transform_indices = @transform_3, window_bounds = array<i64: 1, 16, 64>}]} {
    %c0 = arith.constant 0 : index
    %c0_0 = arith.constant 0 : index
    %c0_1 = arith.constant 0 : index
    %0 = vector.load %arg1[%c0, %c0_0, %c0_1] : memref<1x64x576xbf16, #tpu.memory_space<vmem>>, vector<1x64x576xbf16>
    %1 = vector.shape_cast %0 : vector<1x64x576xbf16> to vector<64x576xbf16>
    %c0_2 = arith.constant 0 : index
    %c0_3 = arith.constant 0 : index
    %2 = vector.load %arg2[%c0_2, %c0_3] : memref<576x64xbf16, #tpu.memory_space<vmem>>, vector<576x64xbf16>
    %cst = arith.constant dense<0.000000e+00> : vector<64x64xf32>
    %3 = tpu.matmul %1, %2, %cst {dimension_numbers = #tpu.dot_dimension_numbers<[1], [0], [0], [1], [0, 0, 1, 1], [], []>} : vector<64x576xbf16>, vector<576x64xbf16>, vector<64x64xf32> -> vector<64x64xf32>
    %4 = vector.shape_cast %3 : vector<64x64xf32> to vector<1x4x16x64xf32>
    %c0_4 = arith.constant 0 : index
    %c0_5 = arith.constant 0 : index
    %5 = vector.load %arg3[%c0_4, %c0_5] : memref<1x64xf32, #tpu.memory_space<vmem>>, vector<1x64xf32>
    %6 = vector.extract_strided_slice %4 {offsets = [0, 0, 0, 0], sizes = [1, 1, 16, 64], strides = [1, 1, 1, 1]} : vector<1x4x16x64xf32> to vector<1x1x16x64xf32>
    %7 = vector.shape_cast %6 : vector<1x1x16x64xf32> to vector<1x16x64xf32>
    %8 = vector.shape_cast %5 : vector<1x64xf32> to vector<1x1x64xf32>
    %9 = vector.broadcast %8 : vector<1x1x64xf32> to vector<1x16x64xf32>
    %10 = arith.addf %7, %9 : vector<1x16x64xf32>
    %cst_6 = arith.constant 0.000000e+00 : f32
    %11 = vector.broadcast %cst_6 : f32 to vector<1x16x64xf32>
    %12 = arith.maximumf %10, %11 : vector<1x16x64xf32>
    %13 = vector.extract_strided_slice %4 {offsets = [0, 1, 0, 0], sizes = [1, 1, 16, 64], strides = [1, 1, 1, 1]} : vector<1x4x16x64xf32> to vector<1x1x16x64xf32>
    %14 = vector.shape_cast %13 : vector<1x1x16x64xf32> to vector<1x16x64xf32>
    %15 = vector.shape_cast %5 : vector<1x64xf32> to vector<1x1x64xf32>
    %16 = vector.broadcast %15 : vector<1x1x64xf32> to vector<1x16x64xf32>
    %17 = arith.addf %14, %16 : vector<1x16x64xf32>
    %cst_7 = arith.constant 0.000000e+00 : f32
    %18 = vector.broadcast %cst_7 : f32 to vector<1x16x64xf32>
    %19 = arith.maximumf %17, %18 : vector<1x16x64xf32>
    %20 = arith.maximumf %12, %19 : vector<1x16x64xf32>
    %21 = vector.extract_strided_slice %4 {offsets = [0, 2, 0, 0], sizes = [1, 1, 16, 64], strides = [1, 1, 1, 1]} : vector<1x4x16x64xf32> to vector<1x1x16x64xf32>
    %22 = vector.shape_cast %21 : vector<1x1x16x64xf32> to vector<1x16x64xf32>
    %23 = vector.shape_cast %5 : vector<1x64xf32> to vector<1x1x64xf32>
    %24 = vector.broadcast %23 : vector<1x1x64xf32> to vector<1x16x64xf32>
    %25 = arith.addf %22, %24 : vector<1x16x64xf32>
    %cst_8 = arith.constant 0.000000e+00 : f32
    %26 = vector.broadcast %cst_8 : f32 to vector<1x16x64xf32>
    %27 = arith.maximumf %25, %26 : vector<1x16x64xf32>
    %28 = arith.maximumf %20, %27 : vector<1x16x64xf32>
    %29 = vector.extract_strided_slice %4 {offsets = [0, 3, 0, 0], sizes = [1, 1, 16, 64], strides = [1, 1, 1, 1]} : vector<1x4x16x64xf32> to vector<1x1x16x64xf32>
    %30 = vector.shape_cast %29 : vector<1x1x16x64xf32> to vector<1x16x64xf32>
    %31 = vector.shape_cast %5 : vector<1x64xf32> to vector<1x1x64xf32>
    %32 = vector.broadcast %31 : vector<1x1x64xf32> to vector<1x16x64xf32>
    %33 = arith.addf %30, %32 : vector<1x16x64xf32>
    %cst_9 = arith.constant 0.000000e+00 : f32
    %34 = vector.broadcast %cst_9 : f32 to vector<1x16x64xf32>
    %35 = arith.maximumf %33, %34 : vector<1x16x64xf32>
    %36 = arith.maximumf %28, %35 : vector<1x16x64xf32>
    %37 = arith.truncf %36 : vector<1x16x64xf32> to vector<1x16x64xbf16>
    %c0_10 = arith.constant 0 : index
    %c0_11 = arith.constant 0 : index
    %c0_12 = arith.constant 0 : index
    %38 = vector.load %arg4[%c0_10, %c0_11, %c0_12] : memref<1x16x64xbf16, #tpu.memory_space<vmem>>, vector<1x16x64xbf16>
    tpu.vector_store %arg4[%c0_10, %c0_11, %c0_12], %37 {strides = array<i32>} : memref<1x16x64xbf16, #tpu.memory_space<vmem>>, vector<1x16x64xbf16>,
    return
  }
  func.func @transform_0(%arg0: i32) -> (i32, i32, i32) {
    %c0_i32 = arith.constant 0 : i32
    %c0_i32_0 = arith.constant 0 : i32
    %c0_i32_1 = arith.constant 0 : i32
    return %arg0, %c0_i32, %c0_i32_0 : i32, i32, i32
  }
  func.func @transform_1(%arg0: i32) -> (i32, i32) {
    %c0_i32 = arith.constant 0 : i32
    %c0_i32_0 = arith.constant 0 : i32
    %c0_i32_1 = arith.constant 0 : i32
    return %c0_i32, %c0_i32_0 : i32, i32
  }
  func.func @transform_2(%arg0: i32) -> (i32, i32) {
    %c0_i32 = arith.constant 0 : i32
    %c0_i32_0 = arith.constant 0 : i32
    %c0_i32_1 = arith.constant 0 : i32
    return %c0_i32, %c0_i32_0 : i32, i32
  }
  func.func @transform_3(%arg0: i32) -> (i32, i32, i32) {
    %c0_i32 = arith.constant 0 : i32
    %c0_i32_0 = arith.constant 0 : i32
    %c0_i32_1 = arith.constant 0 : i32
    return %arg0, %c0_i32, %c0_i32_0 : i32, i32, i32
  }
}

</mosaic_0001>

<bundles_post_ra>
// kernel: cnn_forward.4
= control target key start
LH: loop header
LB: loop body
LE: loop exit
PB: predicated region body
PF: predicated region fallthrough
CT: control target
= control target key end

     0   :  { %s2469_s12 = smov 0   ;;  %s3209_s0 = inlined_call_operand.vmem [shape: bf16[2,1024,27], index: 0, kind: input, shape index: {}]   ;;  %s3210_s1 = inlined_call_operand.vmem [shape: bf16[27,32], index: 1, kind: input, shape index: {}]   ;;  %s3211_s2 = inlined_call_operand.vmem [shape: f32[1,32], index: 2, kind: input, shape index: {}]   ;;  %s3212_s3 = inlined_call_operand.vmem [shape: bf16[2,256,32], index: 3, kind: output, shape index: {}]  }
   0x1 LB: > { %s1955_s13 = sadd.s32 4294967295, %s2446_s12   ;;  %p1959_p0 = scmp.ge.s32.totalorder %s2446_s12, 1  ;;  %s2446_s12 = sphi %s2469_s12, %s13_s12  }
   0x2   : > { %p137_p1 = scmp.lt.s32.totalorder %s2446_s12, 3 }
   0x4   : > { %p138_p2 = pnand %p1959_p0, %p137_p1 }
   0x6   : > { %141 = sbr.rel (%p138_p2) target bundleno = 386 (0x182), region = 32 }
   0xd   : > { %v2374_v0 = vld [vmem:[%s3210_s1] sm:$0xff]   ;;  %vm828_vm0 = vcmask 1044480   ;;  %v2375_v1 = vld [vmem:[%s3210_s1 + $0x8] sm:$0x3f]   ;;  %vm829_vm1 = vcmask 1045504   ;;  %p161_p3 = scmp.lt.s32.totalorder %s1955_s13, 1 }
   0xe   : > { %2229 = vmatprep.subr.bf16.mxu0 %v2374_v0  ;;  %2361 = vmatprep.subr.bf16.mxu1 %v2374_v0  ;;  %v2448_v2 = vmov 65535   ;;  %vm635_vm2 = vcmask 220160   ;;  %vm1867_vm3 = vcmask 257024  }
   0xf   : > { %2230 = vmatpush3.bf16.msra.mxu0 %v2374_v0  ;;  %2363 = vmatpush3.bf16.msra.mxu1 %v2374_v0  ;;  %v830_v3 = vsel %vm828_vm0, 4294967295, %v2448_v2  ;;  %s3337_s13 = smov (!%p161_p3, %s1955_s13), 1 }
  0x10   : > { %v831_v4 = vsel %vm829_vm1, %v830_v3, 0  ;;  %s2129_s18 = sshll.u32 %s3337_s13, 9  ;;  %s2130_s24 = sshll.u32 %s3337_s13, 7 }
  0x11   : > { %v833_v5 = vand.u32 %v2375_v1, %v831_v4  ;;  %s2489_s21 = scalar_lea.vmem %s3209_s0, %s2129_s18  ;;  %s2971_s27 = scalar_lea.vmem %s3212_s3, %s2130_s24 }
  0x12   : > { %v2376_v6 = vld [vmem:[%s2489_s21] sm:$0xff]   ;;  %v2377_v7 = vld [vmem:[%s2489_s21 + $0x8] sm:$0xff]   ;;  %v2380_v10 = vld [vmem:[%s2489_s21 + $0x10] sm:$0xff]  }
  0x13   : > { %2231 = vmatprep.subr.bf16.mxu0 %v833_v5  ;;  %2362 = vmatprep.subr.bf16.mxu1 %v833_v5  ;;  %v2378_v8 = vld [vmem:[%s2489_s21 + $0x100] sm:$0xff]   ;;  %v2379_v9 = vld [vmem:[%s2489_s21 + $0x108] sm:$0xff]   ;;  %v2382_v11 = vld [vmem:[%s2489_s21 + $0x110] sm:$0xff]  }
  0x14   : > { %2232 = vmatpush3.bf16.msra.mxu0 %v833_v5  ;;  %2364 = vmatpush3.bf16.msra.mxu1 %v833_v5  ;;  %v2381_v12 = vld [vmem:[%s2489_s21 + $0x18] sm:$0xff]   ;;  %v2384_v13 = vld [vmem:[%s2489_s21 + $0x20] sm:$0xff]   ;;  %v2385_v16 = vld [vmem:[%s2489_s21 + $0x28] sm:$0xff]  }
  0x15   : > { %2233 = vmatprep.mubr.msk.bf16.mxu0 %vm635_vm2, %v2376_v6  ;;  %2297 = vmatprep.mubr.msk.bf16.mxu1 %vm635_vm2, %v2378_v8  ;;  %v2383_v14 = vld [vmem:[%s2489_s21 + $0x118] sm:$0xff]   ;;  %v2386_v15 = vld [vmem:[%s2489_s21 + $0x120] sm:$0xff]   ;;  %v2388_v17 = vld [vmem:[%s2489_s21 + $0x30] sm:$0xff]  }
  0x16   : > { %v2387_v18 = vld [vmem:[%s2489_s21 + $0x128] sm:$0xff]   ;;  %v2390_v19 = vld [vmem:[%s2489_s21 + $0x130] sm:$0xff]   ;;  %v2389_v20 = vld [vmem:[%s2489_s21 + $0x38] sm:$0xff]  }
  0x17   : > { %2234 = vmatmul.mubr.msk.bf16.vlgmr.msra.gmra.mrb[0].mxu0 %vm635_vm2, %v2377_v7  ;;  %2298 = vmatmul.mubr.msk.bf16.vlgmr.msra.gmra.mrb[0].mxu1 %vm635_vm2, %v2379_v9  ;;  %v2392_v21 = vld [vmem:[%s2489_s21 + $0x40] sm:$0xff]   ;;  %v2391_v22 = vld [vmem:[%s2489_s21 + $0x138] sm:$0xff]   ;;  %v2393_v24 = vld [vmem:[%s2489_s21 + $0x48] sm:$0xff]  }
  0x18   : > { %2237 = vmatprep.mubr.msk.bf16.mxu0 %vm635_vm2, %v2380_v10  ;;  %2301 = vmatprep.mubr.msk.bf16.mxu1 %vm635_vm2, %v2382_v11  ;;  %v2394_v23 = vld [vmem:[%s2489_s21 + $0x140] sm:$0xff]   ;;  %v2396_v25 = vld [vmem:[%s2489_s21 + $0x50] sm:$0xff]   ;;  %v2395_v26 = vld [vmem:[%s2489_s21 + $0x148] sm:$0xff]  }
  0x19   : > { %v2398_v27 = vld [vmem:[%s2489_s21 + $0x150] sm:$0xff]   ;;  %v2397_v28 = vld [vmem:[%s2489_s21 + $0x58] sm:$0xff]   ;;  %v2400_v29 = vld [vmem:[%s2489_s21 + $0x60] sm:$0xff]  }
  0x1a   : > { %v2399_v30 = vld [vmem:[%s2489_s21 + $0x158] sm:$0xff]   ;;  %v2402_v31 = vld [vmem:[%s2489_s21 + $0x160] sm:$0xff]   ;;  %v2401_v32 = vld [vmem:[%s2489_s21 + $0x68] sm:$0xff]  }
  0x1b   : > { %v2404_v33 = vld [vmem:[%s2489_s21 + $0x70] sm:$0xff]   ;;  %v2403_v34 = vld [vmem:[%s2489_s21 + $0x168] sm:$0xff]   ;;  %v2405_v36 = vld [vmem:[%s2489_s21 + $0x78] sm:$0xff]  }
  0x1c   : > { %v2406_v35 = vld [vmem:[%s2489_s21 + $0x170] sm:$0xff]   ;;  %v2408_v37 = vld [vmem:[%s2489_s21 + $0x80] sm:$0xff]   ;;  %v2407_v38 = vld [vmem:[%s2489_s21 + $0x178] sm:$0xff]  }
  0x1d   : > { %v2410_v39 = vld [vmem:[%s2489_s21 + $0x180] sm:$0xff]   ;;  %v2409_v40 = vld [vmem:[%s2489_s21 + $0x88] sm:$0xff]   ;;  %v2412_v41 = vld [vmem:[%s2489_s21 + $0x90] sm:$0xff]  }
  0x1e   : > { %v2411_v42 = vld [vmem:[%s2489_s21 + $0x188] sm:$0xff]   ;;  %v2414_v43 = vld [vmem:[%s2489_s21 + $0x190] sm:$0xff]   ;;  %v2413_v44 = vld [vmem:[%s2489_s21 + $0x98] sm:$0xff]  }
  0x1f   : > { %2238 = vmatmul.mubr.msk.bf16.gmra.mrb[4].mxu0 %vm635_vm2, %v2381_v12  ;;  %2302 = vmatmul.mubr.msk.bf16.gmra.mrb[4].mxu1 %vm635_vm2, %v2383_v14  ;;  %v2416_v45 = vld [vmem:[%s2489_s21 + $0xa0] sm:$0xff]   ;;  %v2415_v46 = vld [vmem:[%s2489_s21 + $0x198] sm:$0xff]   ;;  %v2417_v48 = vld [vmem:[%s2489_s21 + $0xa8] sm:$0xff]  }
  0x20   : > { %2241 = vmatprep.mubr.msk.bf16.mxu0 %vm635_vm2, %v2384_v13  ;;  %2305 = vmatprep.mubr.msk.bf16.mxu1 %vm635_vm2, %v2386_v15  ;;  %v2418_v47 = vld [vmem:[%s2489_s21 + $0x1a0] sm:$0xff]   ;;  %v2420_v49 = vld [vmem:[%s2489_s21 + $0xb0] sm:$0xff]   ;;  %v2419_v50 = vld [vmem:[%s2489_s21 + $0x1a8] sm:$0xff]  }
  0x21   : > { %v2422_v51 = vld [vmem:[%s2489_s21 + $0x1b0] sm:$0xff]   ;;  %v2421_v52 = vld [vmem:[%s2489_s21 + $0xb8] sm:$0xff]   ;;  %v2424_v53 = vld [vmem:[%s2489_s21 + $0xc0] sm:$0xff]  }
  0x22   : > { %v2423_v54 = vld [vmem:[%s2489_s21 + $0x1b8] sm:$0xff]   ;;  %v2426_v55 = vld [vmem:[%s2489_s21 + $0x1c0] sm:$0xff]   ;;  %v2425_v56 = vld [vmem:[%s2489_s21 + $0xc8] sm:$0xff]  }
  0x23   : > { %v2428_v57 = vld [vmem:[%s2489_s21 + $0xd0] sm:$0xff]   ;;  %v2427_v58 = vld [vmem:[%s2489_s21 + $0x1c8] sm:$0xff]   ;;  %v2429_v60 = vld [vmem:[%s2489_s21 + $0xd8] sm:$0xff]  }
  0x24   : > { %v2430_v59 = vld [vmem:[%s2489_s21 + $0x1d0] sm:$0xff]   ;;  %v2432_v61 = vld [vmem:[%s2489_s21 + $0xe0] sm:$0xff]   ;;  %v2431_v62 = vld [vmem:[%s2489_s21 + $0x1d8] sm:$0xff]  }
  0x25   : > { %v2434_v63 = vld [vmem:[%s2489_s21 + $0x1e0] sm:$0xff]   ;;  %v2433_v0 = vld [vmem:[%s2489_s21 + $0xe8] sm:$0xff]   ;;  %v2436_v1 = vld [vmem:[%s2489_s21 + $0xf0] sm:$0xff]  }
  0x26   : > { %v2435_v2 = vld [vmem:[%s2489_s21 + $0x1e8] sm:$0xff]   ;;  %v2438_v3 = vld [vmem:[%s2489_s21 + $0x1f0] sm:$0xff]   ;;  %v2437_v4 = vld [vmem:[%s2489_s21 + $0xf8] sm:$0xff]  }
  0x27   : > { %2242 = vmatmul.mubr.msk.bf16.gmra.mrb[8].mxu0 %vm635_vm2, %v2385_v16  ;;  %2306 = vmatmul.mubr.msk.bf16.gmra.mrb[8].mxu1 %vm635_vm2, %v2387_v18  ;;  %v2439_v5 = vld [vmem:[%s2489_s21 + $0x1f8] sm:$0xff]  }
  0x28   : > { %2245 = vmatprep.mubr.msk.bf16.mxu0 %vm635_vm2, %v2388_v17  ;;  %2309 = vmatprep.mubr.msk.bf16.mxu1 %vm635_vm2, %v2390_v19 }
  0x2f   : > { %2246 = vmatmul.mubr.msk.bf16.gmra.mrb[12].mxu0 %vm635_vm2, %v2389_v20  ;;  %2310 = vmatmul.mubr.msk.bf16.gmra.mrb[12].mxu1 %vm635_vm2, %v2391_v22 }
  0x30   : > { %2249 = vmatprep.mubr.msk.bf16.mxu0 %vm635_vm2, %v2392_v21  ;;  %2313 = vmatprep.mubr.msk.bf16.mxu1 %vm635_vm2, %v2394_v23 }
  0x37   : > { %2250 = vmatmul.mubr.msk.bf16.gmra.mrb[16].mxu0 %vm635_vm2, %v2393_v24  ;;  %2314 = vmatmul.mubr.msk.bf16.gmra.mrb[16].mxu1 %vm635_vm2, %v2395_v26 }
  0x38   : > { %2253 = vmatprep.mubr.msk.bf16.mxu0 %vm635_vm2, %v2396_v25  ;;  %2317 = vmatprep.mubr.msk.bf16.mxu1 %vm635_vm2, %v2398_v27 }
  0x3f   : > { %2254 = vmatmul.mubr.msk.bf16.gmra.mrb[20].mxu0 %vm635_vm2, %v2397_v28  ;;  %2318 = vmatmul.mubr.msk.bf16.gmra.mrb[20].mxu1 %vm635_vm2, %v2399_v30 }
  0x40   : > { %2257 = vmatprep.mubr.msk.bf16.mxu0 %vm635_vm2, %v2400_v29  ;;  %2321 = vmatprep.mubr.msk.bf16.mxu1 %vm635_vm2, %v2402_v31 }
  0x47   : > { %2258 = vmatmul.mubr.msk.bf16.gmra.mrb[24].mxu0 %vm635_vm2, %v2401_v32  ;;  %2322 = vmatmul.mubr.msk.bf16.gmra.mrb[24].mxu1 %vm635_vm2, %v2403_v34 }
  0x48   : > { %2261 = vmatprep.mubr.msk.bf16.mxu0 %vm635_vm2, %v2404_v33  ;;  %2325 = vmatprep.mubr.msk.bf16.mxu1 %vm635_vm2, %v2406_v35 }
  0x4f   : > { %2262 = vmatmul.mubr.msk.bf16.gmra.mrb[28].mxu0 %vm635_vm2, %v2405_v36  ;;  %2326 = vmatmul.mubr.msk.bf16.gmra.mrb[28].mxu1 %vm635_vm2, %v2407_v38  ;;  %v2636_v38 = vld [vmem:[%s3211_s2] ss:$0 sm:$0xff] }
  0x50   : > { %2265 = vmatprep.mubr.msk.bf16.mxu0 %vm635_vm2, %v2408_v37  ;;  %2329 = vmatprep.mubr.msk.bf16.mxu1 %vm635_vm2, %v2410_v39 }
  0x57   : > { %2266 = vmatmul.mubr.msk.bf16.gmra.mrb[32].mxu0 %vm635_vm2, %v2409_v40  ;;  %2330 = vmatmul.mubr.msk.bf16.gmra.mrb[32].mxu1 %vm635_vm2, %v2411_v42 }
  0x58   : > { %2269 = vmatprep.mubr.msk.bf16.mxu0 %vm635_vm2, %v2412_v41  ;;  %2333 = vmatprep.mubr.msk.bf16.mxu1 %vm635_vm2, %v2414_v43 }
  0x5f   : > { %2270 = vmatmul.mubr.msk.bf16.gmra.mrb[36].mxu0 %vm635_vm2, %v2413_v44  ;;  %2334 = vmatmul.mubr.msk.bf16.gmra.mrb[36].mxu1 %vm635_vm2, %v2415_v46 }
  0x60   : > { %2273 = vmatprep.mubr.msk.bf16.mxu0 %vm635_vm2, %v2416_v45  ;;  %2337 = vmatprep.mubr.msk.bf16.mxu1 %vm635_vm2, %v2418_v47 }
  0x67   : > { %2274 = vmatmul.mubr.msk.bf16.gmra.mrb[40].mxu0 %vm635_vm2, %v2417_v48  ;;  %2338 = vmatmul.mubr.msk.bf16.gmra.mrb[40].mxu1 %vm635_vm2, %v2419_v50 }
  0x68   : > { %2277 = vmatprep.mubr.msk.bf16.mxu0 %vm635_vm2, %v2420_v49  ;;  %2341 = vmatprep.mubr.msk.bf16.mxu1 %vm635_vm2, %v2422_v51 }
  0x6f   : > { %2278 = vmatmul.mubr.msk.bf16.gmra.mrb[44].mxu0 %vm635_vm2, %v2421_v52  ;;  %2342 = vmatmul.mubr.msk.bf16.gmra.mrb[44].mxu1 %vm635_vm2, %v2423_v54 }
  0x70   : > { %2281 = vmatprep.mubr.msk.bf16.mxu0 %vm635_vm2, %v2424_v53  ;;  %2345 = vmatprep.mubr.msk.bf16.mxu1 %vm635_vm2, %v2426_v55 }
  0x77   : > { %2282 = vmatmul.mubr.msk.bf16.gmra.mrb[48].mxu0 %vm635_vm2, %v2425_v56  ;;  %2346 = vmatmul.mubr.msk.bf16.gmra.mrb[48].mxu1 %vm635_vm2, %v2427_v58 }
  0x78   : > { %2285 = vmatprep.mubr.msk.bf16.mxu0 %vm635_vm2, %v2428_v57  ;;  %2349 = vmatprep.mubr.msk.bf16.mxu1 %vm635_vm2, %v2430_v59 }
  0x7f   : > { %2286 = vmatmul.mubr.msk.bf16.gmra.mrb[52].mxu0 %vm635_vm2, %v2429_v60  ;;  %2350 = vmatmul.mubr.msk.bf16.gmra.mrb[52].mxu1 %vm635_vm2, %v2431_v62 }
  0x80   : > { %2289 = vmatprep.mubr.msk.bf16.mxu0 %vm635_vm2, %v2432_v61  ;;  %2353 = vmatprep.mubr.msk.bf16.mxu1 %vm635_vm2, %v2434_v63 }
  0x87   : > { %2290 = vmatmul.mubr.msk.bf16.gmra.mrb[56].mxu0 %vm635_vm2, %v2433_v0  ;;  %2354 = vmatmul.mubr.msk.bf16.gmra.mrb[56].mxu1 %vm635_vm2, %v2435_v2 }
  0x88   : > { %2293 = vmatprep.mubr.msk.bf16.mxu0 %vm635_vm2, %v2436_v1  ;;  %2357 = vmatprep.mubr.msk.bf16.mxu1 %vm635_vm2, %v2438_v3 }
  0x8f   : > { %2294 = vmatmul.mubr.msk.bf16.gmra.mrb[60].mxu0 %vm635_vm2, %v2437_v4  ;;  %2358 = vmatmul.mubr.msk.bf16.gmra.mrb[60].mxu1 %vm635_vm2, %v2439_v5 }
  0xea   : > { %v2235_v6 = vpop.f32.mrb[0].mxu0  ;;  %v2299_v8 = vpop.f32.mrb[0].mxu1 }
  0xeb   : > { %v869_v7 = vpop.f32.mrb[1].mxu0  ;;  %v1125_v10 = vpop.f32.mrb[1].mxu1  ;;  %v2647_v43 = vadd.f32 %v2235_v6, %v2636_v38  ;;  %v2653_v45 = vadd.f32 %v2299_v8, %v2636_v38 }
  0xec   : > { %v2236_v9 = vpop.f32.mrb[2].mxu0  ;;  %v2300_v12 = vpop.f32.mrb[2].mxu1  ;;  %v2650_v44 = vadd.f32 %v2636_v38, %v869_v7  ;;  %v2663_v49 = vadd.f32 %v2636_v38, %v1125_v10 }
  0xed   : > { %v872_v11 = vpop.f32.mrb[3].mxu0  ;;  %v1128_v13 = vpop.f32.mrb[3].mxu1  ;;  %v2660_v48 = vadd.f32 %v2236_v9, %v2636_v38  ;;  %v2671_v52 = vadd.f32 %v2300_v12, %v2636_v38 }
  0xee   : > { %v2666_v50 = vadd.f32 %v2636_v38, %v872_v11  ;;  %v2674_v53 = vadd.f32 %v2636_v38, %v1128_v13 }
  0xf2   : > { %v2239_v14 = vpop.f32.mrb[4].mxu0  ;;  %v2303_v16 = vpop.f32.mrb[4].mxu1 }
  0xf3   : > { %v885_v15 = vpop.f32.mrb[5].mxu0  ;;  %v1141_v18 = vpop.f32.mrb[5].mxu1  ;;  %v2677_v54 = vadd.f32 %v2239_v14, %v2636_v38  ;;  %v2688_v60 = vadd.f32 %v2303_v16, %v2636_v38 }
  0xf4   : > { %v2240_v17 = vpop.f32.mrb[6].mxu0  ;;  %v2304_v20 = vpop.f32.mrb[6].mxu1  ;;  %v2682_v56 = vadd.f32 %v2636_v38, %v885_v15  ;;  %v2702_v5 = vadd.f32 %v2636_v38, %v1141_v18 }
  0xf5   : > { %v888_v19 = vpop.f32.mrb[7].mxu0  ;;  %v1144_v21 = vpop.f32.mrb[7].mxu1  ;;  %v2694_v0 = vadd.f32 %v2240_v17, %v2636_v38  ;;  %v2711_v9 = vadd.f32 %v2304_v20, %v2636_v38 }
  0xf6   : > { %v2708_v8 = vadd.f32 %v2636_v38, %v888_v19  ;;  %v2714_v10 = vadd.f32 %v2636_v38, %v1144_v21 }
  0xfa   : > { %v2243_v22 = vpop.f32.mrb[8].mxu0  ;;  %v2307_v24 = vpop.f32.mrb[8].mxu1 }
  0xfb   : > { %v901_v23 = vpop.f32.mrb[9].mxu0  ;;  %v1157_v26 = vpop.f32.mrb[9].mxu1  ;;  %v2722_v14 = vadd.f32 %v2243_v22, %v2636_v38  ;;  %v2728_v16 = vadd.f32 %v2307_v24, %v2636_v38 }
  0xfc   : > { %v2244_v25 = vpop.f32.mrb[10].mxu0  ;;  %v2308_v28 = vpop.f32.mrb[10].mxu1  ;;  %v2725_v15 = vadd.f32 %v2636_v38, %v901_v23  ;;  %v2739_v21 = vadd.f32 %v2636_v38, %v1157_v26 }
  0xfd   : > { %v904_v27 = vpop.f32.mrb[11].mxu0  ;;  %v1160_v29 = vpop.f32.mrb[11].mxu1  ;;  %v2736_v20 = vadd.f32 %v2244_v25, %v2636_v38  ;;  %v2748_v13 = vadd.f32 %v2308_v28, %v2636_v38 }
  0xfe   : > { %v2742_v22 = vadd.f32 %v2636_v38, %v904_v27  ;;  %v2751_v7 = vadd.f32 %v2636_v38, %v1160_v29 }
 0x102   : > { %v2247_v30 = vpop.f32.mrb[12].mxu0  ;;  %v2621_v32 = vpop.f32.mrb[12].mxu1 }
 0x103   : > { %v2619_v31 = vpop.f32.mrb[13].mxu0  ;;  %v2625_v34 = vpop.f32.mrb[13].mxu1  ;;  %v2754_v19 = vadd.f32 %v2247_v30, %v2636_v38  ;;  %v2768_v30 = vadd.f32 %v2621_v32, %v2636_v38 }
 0x104   : > { %v2623_v33 = vpop.f32.mrb[14].mxu0  ;;  %v2629_v36 = vpop.f32.mrb[14].mxu1  ;;  %v2761_v3 = vadd.f32 %v2636_v38, %v2619_v31  ;;  %v2782_v32 = vadd.f32 %v2636_v38, %v2625_v34 }
 0x105   : > { %v2627_v35 = vpop.f32.mrb[15].mxu0  ;;  %v2631_v37 = vpop.f32.mrb[15].mxu1  ;;  %v2775_v31 = vadd.f32 %v2623_v33, %v2636_v38  ;;  %v2791_v33 = vadd.f32 %v2629_v36, %v2636_v38 }
 0x106   : > { %3234 = vst [vmem:[#allocation2_spill] sm:$0xff] %v2782_v32  ;;  %v2787_v27 = vadd.f32 %v2636_v38, %v2627_v35  ;;  %v2795_v24 = vadd.f32 %v2636_v38, %v2631_v37 }
 0x108   : > { %3235 = vst [vmem:[#allocation3_spill] sm:$0xff] %v2795_v24 }
 0x10a   : > { %v2638_v39 = vpop.f32.mrb[16].mxu0  ;;  %v2642_v41 = vpop.f32.mrb[16].mxu1 }
 0x10b   : > { %v2640_v40 = vpop.f32.mrb[17].mxu0  ;;  %v2655_v46 = vpop.f32.mrb[17].mxu1  ;;  %v2800_v63 = vadd.f32 %v2638_v39, %v2636_v38  ;;  %v2808_v36 = vadd.f32 %v2642_v41, %v2636_v38 }
 0x10c   : > { %v2644_v42 = vpop.f32.mrb[18].mxu0  ;;  %v2668_v51 = vpop.f32.mrb[18].mxu1  ;;  %v2804_v35 = vadd.f32 %v2636_v38, %v2640_v40  ;;  %v2817_v39 = vadd.f32 %v2636_v38, %v2655_v46 }
 0x10d   : > { %v2657_v47 = vpop.f32.mrb[19].mxu0  ;;  %v2679_v55 = vpop.f32.mrb[19].mxu1  ;;  %v2813_v61 = vadd.f32 %v2644_v42, %v2636_v38  ;;  %v2826_v59 = vadd.f32 %v2668_v51, %v2636_v38 }
 0x10e   : > { %v2821_v40 = vadd.f32 %v2636_v38, %v2657_v47  ;;  %v2830_v37 = vadd.f32 %v2636_v38, %v2679_v55 }
 0x10f   : > { %3237 = vst [vmem:[#allocation5_spill] sm:$0xff] %v2826_v59 }
 0x110   : > { %3236 = vst [vmem:[#allocation4_spill] sm:$0xff] %v2821_v40  ;;  %3238 = vst [vmem:[#allocation6_spill] sm:$0xff] %v2830_v37 }
 0x112   : > { %v2696_v1 = vpop.f32.mrb[20].mxu0  ;;  %v2716_v11 = vpop.f32.mrb[20].mxu1 }
 0x113   : > { %v2704_v6 = vpop.f32.mrb[21].mxu0  ;;  %v2730_v17 = vpop.f32.mrb[21].mxu1  ;;  %v2834_v42 = vadd.f32 %v2696_v1, %v2636_v38  ;;  %v2848_v1 = vadd.f32 %v2716_v11, %v2636_v38 }
 0x114   : > { %v2718_v12 = vpop.f32.mrb[22].mxu0  ;;  %v2744_v23 = vpop.f32.mrb[22].mxu1  ;;  %v2841_v41 = vadd.f32 %v2636_v38, %v2704_v6  ;;  %v2862_v11 = vadd.f32 %v2636_v38, %v2730_v17 }
 0x115   : > { %v2732_v18 = vpop.f32.mrb[23].mxu0  ;;  %v1208_v25 = vpop.f32.mrb[23].mxu1  ;;  %3239 = vst [vmem:[#allocation7_spill] sm:$0xff] %v2834_v42  ;;  %3241 = vst [vmem:[#allocation9_spill] sm:$0xff] %v2848_v1  ;;  %v2855_v6 = vadd.f32 %v2718_v12, %v2636_v38  ;;  %v2871_v12 = vadd.f32 %v2744_v23, %v2636_v38 }
 0x116   : > { %3240 = vst [vmem:[#allocation8_spill] sm:$0xff] %v2841_v41  ;;  %3243 = vst [vmem:[#allocation11_spill] sm:$0xff] %v2862_v11  ;;  %v2867_v57 = vadd.f32 %v2636_v38, %v2732_v18  ;;  %v2874_v51 = vadd.f32 %v2636_v38, %v1208_v25 }
 0x117   : > { %3242 = vst [vmem:[#allocation10_spill] sm:$0xff] %v2855_v6 }
 0x118   : > { %3244 = vst [vmem:[#allocation12_spill] sm:$0xff] %v2874_v51 }
 0x11a   : > { %v2259_v2 = vpop.f32.mrb[24].mxu0  ;;  %v2323_v29 = vpop.f32.mrb[24].mxu1 }
 0x11b   : > { %v965_v26 = vpop.f32.mrb[25].mxu0  ;;  %v1221_v4 = vpop.f32.mrb[25].mxu1  ;;  %v2878_v17 = vadd.f32 %v2259_v2, %v2636_v38  ;;  %v2884_v18 = vadd.f32 %v2323_v29, %v2636_v38 }
 0x11c   : > { %v2260_v28 = vpop.f32.mrb[26].mxu0  ;;  %v2324_v34 = vpop.f32.mrb[26].mxu1  ;;  %v2881_v47 = vadd.f32 %v2636_v38, %v965_v26  ;;  %v2891_v40 = vadd.f32 %v2636_v38, %v1221_v4 }
 0x11d   : > { %v968_v62 = vpop.f32.mrb[27].mxu0  ;;  %v1224_v46 = vpop.f32.mrb[27].mxu1  ;;  %3246 = vst [vmem:[#allocation14_spill] sm:$0xff] %v2884_v18  ;;  %v2888_v25 = vadd.f32 %v2260_v28, %v2636_v38  ;;  %v2898_v1 = vadd.f32 %v2324_v34, %v2636_v38 }
 0x11e   : > { %3245 = vst [vmem:[#allocation13_spill] sm:$0xff] %v2881_v47  ;;  %3248 = vst [vmem:[#allocation16_spill] sm:$0xff] %v2891_v40  ;;  %v2894_v42 = vadd.f32 %v2636_v38, %v968_v62  ;;  %v2901_v29 = vadd.f32 %v2636_v38, %v1224_v46 }
 0x11f   : > { %3247 = vst [vmem:[#allocation15_spill] sm:$0xff] %v2888_v25  ;;  %3250 = vst [vmem:[#allocation18_spill] sm:$0xff] %v2898_v1  ;;  %v3255_v1 = vmax.f32 %v2647_v43, 0.0  ;;  %v3257_v43 = vmax.f32 %v2653_v45, 0.0 }
 0x120   : > { %3249 = vst [vmem:[#allocation17_spill] sm:$0xff] %v2894_v42  ;;  %3251 = vst [vmem:[#allocation19_spill] sm:$0xff] %v2901_v29 }
 0x122   : > { %v2263_v24 = vpop.f32.mrb[28].mxu0  ;;  %v2327_v55 = vpop.f32.mrb[28].mxu1 }
 0x123   : > { %v981_v58 = vpop.f32.mrb[29].mxu0  ;;  %v1237_v41 = vpop.f32.mrb[29].mxu1  ;;  %v2904_v23 = vadd.f32 %v2263_v24, %v2636_v38  ;;  %v2916_v11 = vadd.f32 %v2327_v55, %v2636_v38 }
 0x124   : > { %v2264_v32 = vpop.f32.mrb[30].mxu0  ;;  %v2328_v2 = vpop.f32.mrb[30].mxu1  ;;  %v2910_v59 = vadd.f32 %v2636_v38, %v981_v58  ;;  %v2930_v24 = vadd.f32 %v2636_v38, %v1237_v41 }
 0x125   : > { %v984_v37 = vpop.f32.mrb[31].mxu0  ;;  %3252 = vst [vmem:[#allocation20_spill] sm:$0xff] %v2904_v23  ;;  %v1240_v28 = vpop.f32.mrb[31].mxu1  ;;  %3254 = vst [vmem:[#allocation22_spill] sm:$0xff] %v2916_v11  ;;  %v2922_v62 = vadd.f32 %v2264_v32, %v2636_v38 }
 0x126   : > { %3253 = vst [vmem:[#allocation21_spill] sm:$0xff] %v2910_v59  ;;  %v2933_v4 = vadd.f32 %v2636_v38, %v984_v37 }
 0x12a   : > { %v2267_v58 = vpop.f32.mrb[32].mxu0  ;;  %v2331_v6 = vpop.f32.mrb[32].mxu1 }
 0x12b   : > { %v1453_v46 = vadd.f32 %v2267_v58, %v2636_v38  ;;  %v997_v55 = vpop.f32.mrb[33].mxu0  ;;  %v1645_v34 = vadd.f32 %v2331_v6, %v2636_v38  ;;  %v1253_v23 = vpop.f32.mrb[33].mxu1 }
 0x12c   : > { %v1451_v32 = vadd.f32 %v2636_v38, %v997_v55  ;;  %v2268_v51 = vpop.f32.mrb[34].mxu0  ;;  %v1643_v37 = vadd.f32 %v2636_v38, %v1253_v23  ;;  %v2332_v42 = vpop.f32.mrb[34].mxu1  ;;  %v1607_v23 = vmax.f32 %v2930_v24, 0.0 }
 0x12d   : > { %v1485_v29 = vmax.f32 %v1453_v46, 0.0  ;;  %v1454_v58 = vadd.f32 %v2268_v51, %v2636_v38  ;;  %v1000_v18 = vpop.f32.mrb[35].mxu0  ;;  %v1677_v26 = vmax.f32 %v1645_v34, 0.0  ;;  %v1646_v6 = vadd.f32 %v2332_v42, %v2636_v38  ;;  %v1256_v11 = vpop.f32.mrb[35].mxu1 }
 0x12e   : > { %v1483_v59 = vmax.f32 %v1451_v32, 0.0  ;;  %v1452_v55 = vadd.f32 %v2636_v38, %v1000_v18  ;;  %v3256_v51 = vmax.f32 %v2650_v44, 0.0  ;;  %v1675_v47 = vmax.f32 %v1643_v37, 0.0 }
 0x12f   : > { %v1517_v40 = vmax.f32 %v3255_v1, %v1485_v29  ;;  %v1486_v46 = vmax.f32 %v1454_v58, 0.0  ;;  %v1644_v32 = vadd.f32 %v2636_v38, %v1256_v11  ;;  %v2950_v18 = vadd.f32 %v2328_v2, %v2636_v38 }
 0x130   : > { %v1515_v25 = vmax.f32 %v3256_v51, %v1483_v59  ;;  %v1484_v41 = vmax.f32 %v1452_v55, 0.0  ;;  %v3258_v29 = vmax.f32 %v2660_v48, 0.0  ;;  %v1448_v34 = vmax.f32 %v2933_v4, 0.0 }
 0x131   : > { %v1613_v1 = vmax.f32 %v1517_v40, %v3257_v43  ;;  %v2959_v44 = vadd.f32 %v2636_v38, %v1240_v28  ;;  %v3259_v59 = vmax.f32 %v2663_v49, 0.0  ;;  %v3260_v58 = vmax.f32 %v2666_v50, 0.0 }
 0x132   : > { %v1518_v42 = vmax.f32 %v3258_v29, %v1486_v46  ;;  %v2271_v2 = vpop.f32.mrb[36].mxu0  ;;  %v3261_v51 = vmax.f32 %v2671_v52, 0.0  ;;  %v1678_v40 = vmax.f32 %v1646_v6, 0.0  ;;  %v3262_v49 = vmax.f32 %v2674_v53, 0.0 }
 0x133   : > { %v1611_v11 = vmax.f32 %v1515_v25, %v3259_v59  ;;  %v1516_v37 = vmax.f32 %v3260_v58, %v1484_v41  ;;  %v1709_v55 = vmax.f32 %v1613_v1, %v1677_v26  ;;  %v1457_v48 = vadd.f32 %v2271_v2, %v2636_v38  ;;  %v1013_v46 = vpop.f32.mrb[37].mxu0  ;;  %v2335_v41 = vpop.f32.mrb[36].mxu1 }
 0x134   : > { %v1614_v45 = vmax.f32 %v1518_v42, %v3261_v51  ;;  %v1676_v50 = vmax.f32 %v1644_v32, 0.0  ;;  %v1455_v26 = vadd.f32 %v2636_v38, %v1013_v46  ;;  %v2272_v52 = vpop.f32.mrb[38].mxu0  ;;  %v1649_v29 = vadd.f32 %v2335_v41, %v2636_v38  ;;  %v1269_v42 = vpop.f32.mrb[37].mxu1 }
 0x135   : > { %v1707_v28 = vmax.f32 %v1611_v11, %v1675_v47  ;;  %v1612_v25 = vmax.f32 %v1516_v37, %v3262_v49  ;;  %v2133_v43 = vpack.c.bf16 %v1709_v55, %v1709_v55  ;;  %v1489_v1 = vmax.f32 %v1457_v48, 0.0  ;;  %v1016_v59 = vpop.f32.mrb[39].mxu0  ;;  %v2336_v37 = vpop.f32.mrb[38].mxu1 }
 0x136   : > { %v1710_v6 = vmax.f32 %v1614_v45, %v1678_v40  ;;  %v1487_v11 = vmax.f32 %v1455_v26, 0.0  ;;  %v1458_v53 = vadd.f32 %v2272_v52, %v2636_v38  ;;  %v3263_v2 = vmax.f32 %v2677_v54, 0.0  ;;  %v1272_v40 = vpop.f32.mrb[39].mxu1 }
 0x137   : > { %v2131_v58 = vpack.c.bf16 %v1707_v28, %v1707_v28  ;;  %v1708_v47 = vmax.f32 %v1612_v25, %v1676_v50  ;;  %1870 = vst.msk [vmem:[%s2971_s27 + $0x8] sm:$0xf] %vm1867_vm3, %v2133_v43  ;;  %v1681_v51 = vmax.f32 %v1649_v29, 0.0  ;;  %v1647_v45 = vadd.f32 %v2636_v38, %v1269_v42 }
 0x138   : > { %v2134_v32 = vpack.c.bf16 %v1710_v6, %v1710_v6  ;;  %v1521_v55 = vmax.f32 %v3263_v2, %v1489_v1  ;;  %v3264_v46 = vmax.f32 %v2682_v56, 0.0  ;;  %v1490_v49 = vmax.f32 %v1458_v53, 0.0 }
 0x139   : > { %1868 = vst.msk [vmem:[%s2971_s27] sm:$0xf] %vm1867_vm3, %v2131_v58  ;;  %v2132_v48 = vpack.c.bf16 %v1708_v47, %v1708_v47  ;;  %v1456_v25 = vadd.f32 %v2636_v38, %v1016_v59  ;;  %v3265_v50 = vmax.f32 %v2688_v60, 0.0  ;;  %v1679_v26 = vmax.f32 %v1647_v45, 0.0 }
 0x13a   : > { %v1519_v28 = vmax.f32 %v3264_v46, %v1487_v11  ;;  %1871 = vst.msk [vmem:[%s2971_s27 + $0xc] sm:$0xf] %vm1867_vm3, %v2134_v32  ;;  %v1650_v41 = vadd.f32 %v2336_v37, %v2636_v38  ;;  %v1648_v52 = vadd.f32 %v2636_v38, %v1272_v40  ;;  %v1610_v43 = vmax.f32 %v2950_v18, 0.0  ;;  %v2275_v59 = vpop.f32.mrb[40].mxu0 }
 0x13b   : > { %v1617_v54 = vmax.f32 %v1521_v55, %v3265_v50  ;;  %1869 = vst.msk [vmem:[%s2971_s27 + $0x4] sm:$0xf] %vm1867_vm3, %v2132_v48  ;;  %v3266_v56 = vmax.f32 %v2694_v0, 0.0  ;;  %v3267_v1 = vmax.f32 %v2702_v5, 0.0  ;;  %v1488_v42 = vmax.f32 %v1456_v25, 0.0  ;;  %v1029_v53 = vpop.f32.mrb[41].mxu0 }
 0x13c   : > { %v1682_v60 = vmax.f32 %v1650_v41, 0.0  ;;  %v1680_v47 = vmax.f32 %v1648_v52, 0.0  ;;  %v1461_v11 = vadd.f32 %v2275_v59, %v2636_v38  ;;  %v3268_v32 = vmax.f32 %v2708_v8, 0.0  ;;  %v2339_v5 = vpop.f32.mrb[40].mxu1  ;;  %v2276_v40 = vpop.f32.mrb[42].mxu0 }
 0x13d   : > { %v1522_v6 = vmax.f32 %v3266_v56, %v1490_v49  ;;  %v1615_v29 = vmax.f32 %v1519_v28, %v3267_v1  ;;  %v1713_v58 = vmax.f32 %v1617_v54, %v1681_v51  ;;  %v3269_v55 = vmax.f32 %v2711_v9, 0.0  ;;  %v1285_v49 = vpop.f32.mrb[41].mxu1  ;;  %v1032_v25 = vpop.f32.mrb[43].mxu0 }
 0x13e   : > { %v1520_v2 = vmax.f32 %v3268_v32, %v1488_v42  ;;  %v1459_v45 = vadd.f32 %v2636_v38, %v1029_v53  ;;  %v1493_v46 = vmax.f32 %v1461_v11, 0.0  ;;  %v1653_v51 = vadd.f32 %v2339_v5, %v2636_v38  ;;  %v2340_v41 = vpop.f32.mrb[42].mxu1 }
 0x13f   : > { %v1711_v37 = vmax.f32 %v1615_v29, %v1679_v26  ;;  %v1618_v0 = vmax.f32 %v1522_v6, %v3269_v55  ;;  %v2137_v48 = vpack.c.bf16 %v1713_v58, %v1713_v58  ;;  %v1462_v28 = vadd.f32 %v2276_v40, %v2636_v38  ;;  %v1288_v42 = vpop.f32.mrb[43].mxu1 }
 0x140   : > { %v3270_v54 = vmax.f32 %v2714_v10, 0.0  ;;  %v1491_v26 = vmax.f32 %v1459_v45, 0.0  ;;  %v3271_v52 = vmax.f32 %v2722_v14, 0.0  ;;  %v1685_v6 = vmax.f32 %v1653_v51, 0.0 }
 0x141   : > { %v2135_v50 = vpack.c.bf16 %v1711_v37, %v1711_v37  ;;  %v1714_v8 = vmax.f32 %v1618_v0, %v1682_v60  ;;  %1874 = vst.msk [vmem:[%s2971_s27 + $0x18] sm:$0xf] %vm1867_vm3, %v2137_v48  ;;  %v1494_v1 = vmax.f32 %v1462_v28, 0.0  ;;  %v1651_v29 = vadd.f32 %v2636_v38, %v1285_v49 }
 0x142   : > { %v1616_v9 = vmax.f32 %v1520_v2, %v3270_v54  ;;  %v1525_v56 = vmax.f32 %v3271_v52, %v1493_v46  ;;  %v3272_v10 = vmax.f32 %v2725_v15, 0.0  ;;  %v1460_v11 = vadd.f32 %v2636_v38, %v1032_v25  ;;  %v2279_v40 = vpop.f32.mrb[44].mxu0  ;;  %v2343_v54 = vpop.f32.mrb[44].mxu1 }
 0x143   : > { %1872 = vst.msk [vmem:[%s2971_s27 + $0x10] sm:$0xf] %vm1867_vm3, %v2135_v50  ;;  %v2138_v59 = vpack.c.bf16 %v1714_v8, %v1714_v8  ;;  %v3273_v53 = vmax.f32 %v2728_v16, 0.0  ;;  %v3274_v14 = vmax.f32 %v2736_v20, 0.0  ;;  %v1683_v2 = vmax.f32 %v1651_v29, 0.0  ;;  %v1045_v28 = vpop.f32.mrb[45].mxu0 }
 0x144   : > { %v1712_v58 = vmax.f32 %v1616_v9, %v1680_v47  ;;  %v1523_v60 = vmax.f32 %v3272_v10, %v1491_v26  ;;  %v1654_v55 = vadd.f32 %v2340_v41, %v2636_v38  ;;  %v3275_v47 = vmax.f32 %v2739_v21, 0.0  ;;  %v2280_v9 = vpop.f32.mrb[46].mxu0 }
 0x145   : > { %v1621_v37 = vmax.f32 %v1525_v56, %v3273_v53  ;;  %v1526_v32 = vmax.f32 %v3274_v14, %v1494_v1  ;;  %1875 = vst.msk [vmem:[%s2971_s27 + $0x1c] sm:$0xf] %vm1867_vm3, %v2138_v59  ;;  %v1492_v15 = vmax.f32 %v1460_v11, 0.0  ;;  %v1652_v5 = vadd.f32 %v2636_v38, %v1288_v42  ;;  %v1301_v56 = vpop.f32.mrb[45].mxu1 }
 0x146   : > { %v2136_v0 = vpack.c.bf16 %v1712_v58, %v1712_v58  ;;  %v1619_v45 = vmax.f32 %v1523_v60, %v3275_v47  ;;  %v3276_v16 = vmax.f32 %v2748_v13, 0.0  ;;  %v1686_v51 = vmax.f32 %v1654_v55, 0.0  ;;  %v2344_v58 = vpop.f32.mrb[46].mxu1 }
 0x147   : > { %v1717_v48 = vmax.f32 %v1621_v37, %v1685_v6  ;;  %v1465_v20 = vadd.f32 %v2279_v40, %v2636_v38  ;;  %v3277_v25 = vmax.f32 %v2742_v22, 0.0  ;;  %v1684_v21 = vmax.f32 %v1652_v5, 0.0  ;;  %v1048_v6 = vpop.f32.mrb[47].mxu0  ;;  %v1304_v14 = vpop.f32.mrb[47].mxu1 }
 0x148   : > { %v1622_v46 = vmax.f32 %v1526_v32, %v3276_v16  ;;  %1873 = vst.msk [vmem:[%s2971_s27 + $0x14] sm:$0xf] %vm1867_vm3, %v2136_v0  ;;  %v1715_v49 = vmax.f32 %v1619_v45, %v1683_v2  ;;  %v1463_v8 = vadd.f32 %v2636_v38, %v1045_v28  ;;  %v1657_v52 = vadd.f32 %v2343_v54, %v2636_v38 }
 0x149   : > { %v1524_v50 = vmax.f32 %v3277_v25, %v1492_v15  ;;  %v2141_v26 = vpack.c.bf16 %v1717_v48, %v1717_v48  ;;  %v1497_v13 = vmax.f32 %v1465_v20, 0.0  ;;  %v3278_v29 = vmax.f32 %v2751_v7, 0.0 }
 0x14a   : > { %v1718_v41 = vmax.f32 %v1622_v46, %v1686_v51  ;;  %v2139_v1 = vpack.c.bf16 %v1715_v49, %v1715_v49  ;;  %v1495_v42 = vmax.f32 %v1463_v8, 0.0  ;;  %v1466_v59 = vadd.f32 %v2280_v9, %v2636_v38  ;;  %v2283_v28 = vpop.f32.mrb[48].mxu0 }
 0x14b   : > { %v1620_v22 = vmax.f32 %v1524_v50, %v3278_v29  ;;  %1878 = vst.msk [vmem:[%s2971_s27 + $0x28] sm:$0xf] %vm1867_vm3, %v2141_v26  ;;  %v3279_v60 = vmax.f32 %v2754_v19, 0.0  ;;  %v1689_v53 = vmax.f32 %v1657_v52, 0.0  ;;  %v1655_v37 = vadd.f32 %v2636_v38, %v1301_v56 }
 0x14c   : > { %v2142_v10 = vpack.c.bf16 %v1718_v41, %v1718_v41  ;;  %1876 = vst.msk [vmem:[%s2971_s27 + $0x20] sm:$0xf] %vm1867_vm3, %v2139_v1  ;;  %v3280_v7 = vmax.f32 %v2761_v3, 0.0  ;;  %v1498_v55 = vmax.f32 %v1466_v59, 0.0  ;;  %v1464_v0 = vadd.f32 %v2636_v38, %v1048_v6  ;;  %v3283_v3 = vld [vmem:[#allocation2_spill] sm:$0xff] }
 0x14d   : > { %v1529_v11 = vmax.f32 %v3279_v60, %v1497_v13  ;;  %v1716_v32 = vmax.f32 %v1620_v22, %v1684_v21  ;;  %v3281_v47 = vmax.f32 %v2768_v30, 0.0  ;;  %v1687_v45 = vmax.f32 %v1655_v37, 0.0  ;;  %v1061_v21 = vpop.f32.mrb[49].mxu0  ;;  %v2347_v13 = vpop.f32.mrb[48].mxu1 }
 0x14e   : > { %v1527_v2 = vmax.f32 %v3280_v7, %v1495_v42  ;;  %1879 = vst.msk [vmem:[%s2971_s27 + $0x2c] sm:$0xf] %vm1867_vm3, %v2142_v10  ;;  %v1658_v15 = vadd.f32 %v2344_v58, %v2636_v38  ;;  %v1656_v5 = vadd.f32 %v2636_v38, %v1304_v14  ;;  %v3282_v48 = vmax.f32 %v2775_v31, 0.0  ;;  %v2284_v52 = vpop.f32.mrb[50].mxu0  ;;  %v1317_v22 = vpop.f32.mrb[49].mxu1  ;;  %v3287_v58 = vld [vmem:[#allocation3_spill] sm:$0xff] }
 0x14f   : > { %v1625_v19 = vmax.f32 %v1529_v11, %v3281_v47  ;;  %v2140_v40 = vpack.c.bf16 %v1716_v32, %v1716_v32  ;;  %v3284_v46 = vmax.f32 %v3283_v3, 0.0  ;;  %v1496_v20 = vmax.f32 %v1464_v0, 0.0  ;;  %v1064_v42 = vpop.f32.mrb[51].mxu0  ;;  %v2348_v11 = vpop.f32.mrb[50].mxu1 }
 0x150   : > { %v1530_v16 = vmax.f32 %v3282_v48, %v1498_v55  ;;  %v1690_v25 = vmax.f32 %v1658_v15, 0.0  ;;  %v1688_v50 = vmax.f32 %v1656_v5, 0.0  ;;  %v1469_v30 = vadd.f32 %v2283_v28, %v2636_v38 }
 0x151   : > { %v1623_v51 = vmax.f32 %v1527_v2, %v3284_v46  ;;  %v1721_v49 = vmax.f32 %v1625_v19, %v1689_v53  ;;  %1877 = vst.msk [vmem:[%s2971_s27 + $0x24] sm:$0xf] %vm1867_vm3, %v2140_v40  ;;  %v3285_v54 = vmax.f32 %v2787_v27, 0.0  ;;  %v3286_v31 = vmax.f32 %v2791_v33, 0.0  ;;  %v1320_v2 = vpop.f32.mrb[51].mxu1 }
 0x152   : > { %v1467_v41 = vadd.f32 %v2636_v38, %v1061_v21  ;;  %v1501_v6 = vmax.f32 %v1469_v30, 0.0  ;;  %v1661_v1 = vadd.f32 %v2347_v13, %v2636_v38  ;;  %v1470_v29 = vadd.f32 %v2284_v52, %v2636_v38  ;;  %v2287_v28 = vpop.f32.mrb[52].mxu0 }
 0x153   : > { %v1719_v8 = vmax.f32 %v1623_v51, %v1687_v45  ;;  %v1528_v9 = vmax.f32 %v3285_v54, %v1496_v20  ;;  %v1626_v26 = vmax.f32 %v1530_v16, %v3286_v31  ;;  %v2145_v56 = vpack.c.bf16 %v1721_v49, %v1721_v49  ;;  %v1077_v21 = vpop.f32.mrb[53].mxu0  ;;  %v3296_v54 = vld [vmem:[#allocation4_spill] sm:$0xff] }
 0x154   : > { %v3288_v10 = vmax.f32 %v3287_v58, 0.0  ;;  %v1499_v60 = vmax.f32 %v1467_v41, 0.0  ;;  %v3289_v53 = vmax.f32 %v2800_v63, 0.0  ;;  %v1693_v14 = vmax.f32 %v1661_v1, 0.0  ;;  %v2351_v41 = vpop.f32.mrb[52].mxu1  ;;  %v2288_v13 = vpop.f32.mrb[54].mxu0 }
 0x155   : > { %v2143_v59 = vpack.c.bf16 %v1719_v8, %v1719_v8  ;;  %v1722_v27 = vmax.f32 %v1626_v26, %v1690_v25  ;;  %1882 = vst.msk [vmem:[%s2971_s27 + $0x38] sm:$0xf] %vm1867_vm3, %v2145_v56  ;;  %v1502_v32 = vmax.f32 %v1470_v29, 0.0  ;;  %v1659_v7 = vadd.f32 %v2636_v38, %v1317_v22  ;;  %v1333_v29 = vpop.f32.mrb[53].mxu1  ;;  %v1080_v22 = vpop.f32.mrb[55].mxu0 }
 0x156   : > { %v1624_v33 = vmax.f32 %v1528_v9, %v3288_v10  ;;  %v1533_v37 = vmax.f32 %v3289_v53, %v1501_v6  ;;  %v3290_v47 = vmax.f32 %v2804_v35, 0.0  ;;  %v1468_v45 = vadd.f32 %v2636_v38, %v1064_v42  ;;  %v3300_v53 = vld [vmem:[#allocation7_spill] sm:$0xff] }
 0x157   : > { %1880 = vst.msk [vmem:[%s2971_s27 + $0x30] sm:$0xf] %vm1867_vm3, %v2143_v59  ;;  %v2146_v55 = vpack.c.bf16 %v1722_v27, %v1722_v27  ;;  %v3291_v15 = vmax.f32 %v2808_v36, 0.0  ;;  %v3292_v63 = vmax.f32 %v2813_v61, 0.0  ;;  %v1691_v48 = vmax.f32 %v1659_v7, 0.0  ;;  %v3294_v36 = vld [vmem:[#allocation5_spill] sm:$0xff] }
 0x158   : > { %v1720_v0 = vmax.f32 %v1624_v33, %v1688_v50  ;;  %v1531_v19 = vmax.f32 %v3290_v47, %v1499_v60  ;;  %v1662_v16 = vadd.f32 %v2348_v11, %v2636_v38  ;;  %v3293_v46 = vmax.f32 %v2817_v39, 0.0  ;;  %v3298_v59 = vld [vmem:[#allocation6_spill] sm:$0xff]  ;;  %v2352_v60 = vpop.f32.mrb[54].mxu1 }
 0x159   : > { %v1629_v5 = vmax.f32 %v1533_v37, %v3291_v15  ;;  %v1534_v40 = vmax.f32 %v3292_v63, %v1502_v32  ;;  %1883 = vst.msk [vmem:[%s2971_s27 + $0x3c] sm:$0xf] %vm1867_vm3, %v2146_v55  ;;  %v1500_v35 = vmax.f32 %v1468_v45, 0.0  ;;  %v1660_v20 = vadd.f32 %v2636_v38, %v1320_v2  ;;  %v1336_v2 = vpop.f32.mrb[55].mxu1 }
 0x15a   : > { %v2144_v3 = vpack.c.bf16 %v1720_v0, %v1720_v0  ;;  %v1627_v51 = vmax.f32 %v1531_v19, %v3293_v46  ;;  %v3295_v25 = vmax.f32 %v3294_v36, 0.0  ;;  %v1694_v30 = vmax.f32 %v1662_v16, 0.0  ;;  %v3302_v0 = vld [vmem:[#allocation8_spill] sm:$0xff] }
 0x15b   : > { %v1725_v49 = vmax.f32 %v1629_v5, %v1693_v14  ;;  %v1473_v61 = vadd.f32 %v2287_v28, %v2636_v38  ;;  %v3297_v9 = vmax.f32 %v3296_v54, 0.0  ;;  %v1692_v39 = vmax.f32 %v1660_v20, 0.0  ;;  %v3304_v5 = vld [vmem:[#allocation9_spill] sm:$0xff]  ;;  %v3308_v28 = vld [vmem:[#allocation11_spill] sm:$0xff] }
 0x15c   : > { %v1630_v50 = vmax.f32 %v1534_v40, %v3295_v25  ;;  %1881 = vst.msk [vmem:[%s2971_s27 + $0x34] sm:$0xf] %vm1867_vm3, %v2144_v3  ;;  %v1723_v8 = vmax.f32 %v1627_v51, %v1691_v48  ;;  %v1471_v26 = vadd.f32 %v2636_v38, %v1077_v21  ;;  %v1665_v1 = vadd.f32 %v2351_v41, %v2636_v38  ;;  %v3306_v51 = vld [vmem:[#allocation10_spill] sm:$0xff] }
 0x15d   : > { %v1532_v31 = vmax.f32 %v3297_v9, %v1500_v35  ;;  %v2149_v52 = vpack.c.bf16 %v1725_v49, %v1725_v49  ;;  %v1505_v6 = vmax.f32 %v1473_v61, 0.0  ;;  %v3299_v27 = vmax.f32 %v3298_v59, 0.0 }
 0x15e   : > { %v1726_v56 = vmax.f32 %v1630_v50, %v1694_v30  ;;  %v2147_v42 = vpack.c.bf16 %v1723_v8, %v1723_v8  ;;  %v1503_v10 = vmax.f32 %v1471_v26, 0.0  ;;  %v1474_v33 = vadd.f32 %v2288_v13, %v2636_v38  ;;  %v2291_v50 = vpop.f32.mrb[56].mxu0 }
 0x15f   : > { %v1628_v58 = vmax.f32 %v1532_v31, %v3299_v27  ;;  %1886 = vst.msk [vmem:[%s2971_s27 + $0x48] sm:$0xf] %vm1867_vm3, %v2149_v52  ;;  %v3301_v37 = vmax.f32 %v3300_v53, 0.0  ;;  %v1697_v32 = vmax.f32 %v1665_v1, 0.0  ;;  %v1663_v7 = vadd.f32 %v2636_v38, %v1333_v29  ;;  %v1093_v54 = vpop.f32.mrb[57].mxu0  ;;  %v2355_v52 = vpop.f32.mrb[56].mxu1 }
 0x160   : > { %v2150_v11 = vpack.c.bf16 %v1726_v56, %v1726_v56  ;;  %1884 = vst.msk [vmem:[%s2971_s27 + $0x40] sm:$0xf] %vm1867_vm3, %v2147_v42  ;;  %v3303_v47 = vmax.f32 %v3302_v0, 0.0  ;;  %v1506_v45 = vmax.f32 %v1474_v33, 0.0  ;;  %v1472_v15 = vadd.f32 %v2636_v38, %v1080_v22  ;;  %v2292_v56 = vpop.f32.mrb[58].mxu0  ;;  %v1349_v42 = vpop.f32.mrb[57].mxu1 }
 0x161   : > { %v1537_v14 = vmax.f32 %v3301_v37, %v1505_v6  ;;  %v1724_v55 = vmax.f32 %v1628_v58, %v1692_v39  ;;  %v3305_v63 = vmax.f32 %v3304_v5, 0.0  ;;  %v1695_v48 = vmax.f32 %v1663_v7, 0.0  ;;  %v1096_v59 = vpop.f32.mrb[59].mxu0  ;;  %v3312_v58 = vld [vmem:[#allocation12_spill] sm:$0xff]  ;;  %v3315_v0 = vld [vmem:[#allocation13_spill] sm:$0xff] }
 0x162   : > { %v1535_v19 = vmax.f32 %v3303_v47, %v1503_v10  ;;  %1887 = vst.msk [vmem:[%s2971_s27 + $0x4c] sm:$0xf] %vm1867_vm3, %v2150_v11  ;;  %v1666_v16 = vadd.f32 %v2352_v60, %v2636_v38  ;;  %v1664_v3 = vadd.f32 %v2636_v38, %v1336_v2  ;;  %v3307_v35 = vmax.f32 %v3306_v51, 0.0  ;;  %v2356_v60 = vpop.f32.mrb[58].mxu1  ;;  %v3321_v51 = vld [vmem:[#allocation16_spill] sm:$0xff] }
 0x163   : > { %v1633_v40 = vmax.f32 %v1537_v14, %v3305_v63  ;;  %v2148_v46 = vpack.c.bf16 %v1724_v55, %v1724_v55  ;;  %v3309_v49 = vmax.f32 %v3308_v28, 0.0  ;;  %v1504_v25 = vmax.f32 %v1472_v15, 0.0  ;;  %v1352_v7 = vpop.f32.mrb[59].mxu1  ;;  %v3317_v15 = vld [vmem:[#allocation14_spill] sm:$0xff] }
 0x164   : > { %v1538_v20 = vmax.f32 %v3307_v35, %v1506_v45  ;;  %v1698_v61 = vmax.f32 %v1666_v16, 0.0  ;;  %v1696_v21 = vmax.f32 %v1664_v3, 0.0  ;;  %v1477_v8 = vadd.f32 %v2291_v50, %v2636_v38  ;;  %v3323_v50 = vld [vmem:[#allocation18_spill] sm:$0xff] }
 0x165   : > { %v1631_v36 = vmax.f32 %v1535_v19, %v3309_v49  ;;  %v1729_v30 = vmax.f32 %v1633_v40, %v1697_v32  ;;  %1885 = vst.msk [vmem:[%s2971_s27 + $0x44] sm:$0xf] %vm1867_vm3, %v2148_v46  ;;  %v3310_v31 = vmax.f32 %v2867_v57, 0.0  ;;  %v3311_v26 = vmax.f32 %v2871_v12, 0.0 }
 0x166   : > { %v1475_v13 = vadd.f32 %v2636_v38, %v1093_v54  ;;  %v1509_v1 = vmax.f32 %v1477_v8, 0.0  ;;  %v1669_v29 = vadd.f32 %v2355_v52, %v2636_v38  ;;  %v1478_v22 = vadd.f32 %v2292_v56, %v2636_v38  ;;  %v2359_v52 = vpop.f32.mrb[60].mxu1 }
 0x167   : > { %v1727_v9 = vmax.f32 %v1631_v36, %v1695_v48  ;;  %v1536_v39 = vmax.f32 %v3310_v31, %v1504_v25  ;;  %v1634_v41 = vmax.f32 %v1538_v20, %v3311_v26  ;;  %v2153_v6 = vpack.c.bf16 %v1729_v30, %v1729_v30  ;;  %v2295_v36 = vpop.f32.mrb[60].mxu0  ;;  %v3325_v31 = vld [vmem:[#allocation17_spill] sm:$0xff] }
 0x168   : > { %v3313_v10 = vmax.f32 %v3312_v58, 0.0  ;;  %v1507_v33 = vmax.f32 %v1475_v13, 0.0  ;;  %v3314_v11 = vmax.f32 %v2878_v17, 0.0  ;;  %v1701_v37 = vmax.f32 %v1669_v29, 0.0  ;;  %v3319_v17 = vld [vmem:[#allocation15_spill] sm:$0xff]  ;;  %v1109_v54 = vpop.f32.mrb[61].mxu0 }
 0x169   : > { %v2151_v27 = vpack.c.bf16 %v1727_v9, %v1727_v9  ;;  %v1730_v57 = vmax.f32 %v1634_v41, %v1698_v61  ;;  %1890 = vst.msk [vmem:[%s2971_s27 + $0x58] sm:$0xf] %vm1867_vm3, %v2153_v6  ;;  %v1510_v14 = vmax.f32 %v1478_v22, 0.0  ;;  %v1667_v32 = vadd.f32 %v2636_v38, %v1349_v42  ;;  %v2296_v56 = vpop.f32.mrb[62].mxu0  ;;  %v1365_v42 = vpop.f32.mrb[61].mxu1 }
 0x16a   : > { %v1632_v12 = vmax.f32 %v1536_v39, %v3313_v10  ;;  %v1541_v53 = vmax.f32 %v3314_v11, %v1509_v1  ;;  %v3316_v47 = vmax.f32 %v3315_v0, 0.0  ;;  %v1476_v45 = vadd.f32 %v2636_v38, %v1096_v59  ;;  %v1112_v59 = vpop.f32.mrb[63].mxu0  ;;  %v3331_v0 = vld [vmem:[#allocation21_spill] sm:$0xff] }
 0x16b   : > { %1888 = vst.msk [vmem:[%s2971_s27 + $0x50] sm:$0xf] %vm1867_vm3, %v2151_v27  ;;  %v2154_v2 = vpack.c.bf16 %v1730_v57, %v1730_v57  ;;  %v3318_v5 = vmax.f32 %v3317_v15, 0.0  ;;  %v3320_v40 = vmax.f32 %v3319_v17, 0.0  ;;  %v1699_v16 = vmax.f32 %v1667_v32, 0.0  ;;  %v3327_v57 = vld [vmem:[#allocation19_spill] sm:$0xff] }
 0x16c   : > { %v1728_v55 = vmax.f32 %v1632_v12, %v1696_v21  ;;  %v1539_v19 = vmax.f32 %v3316_v47, %v1507_v33  ;;  %v1670_v3 = vadd.f32 %v2356_v60, %v2636_v38  ;;  %v3322_v35 = vmax.f32 %v3321_v51, 0.0  ;;  %v2360_v60 = vpop.f32.mrb[62].mxu1 }
 0x16d   : > { %v1637_v63 = vmax.f32 %v1541_v53, %v3318_v5  ;;  %v1542_v48 = vmax.f32 %v3320_v40, %v1510_v14  ;;  %1891 = vst.msk [vmem:[%s2971_s27 + $0x5c] sm:$0xf] %vm1867_vm3, %v2154_v2  ;;  %v1508_v28 = vmax.f32 %v1476_v45, 0.0  ;;  %v1668_v49 = vadd.f32 %v2636_v38, %v1352_v7  ;;  %v3329_v53 = vld [vmem:[#allocation20_spill] sm:$0xff]  ;;  %v1368_v2 = vpop.f32.mrb[63].mxu1  ;;  %v3333_v5 = vld [vmem:[#allocation22_spill] sm:$0xff] }
 0x16e   : > { %v2152_v46 = vpack.c.bf16 %v1728_v55, %v1728_v55  ;;  %v1635_v20 = vmax.f32 %v1539_v19, %v3322_v35  ;;  %v3324_v30 = vmax.f32 %v3323_v50, 0.0  ;;  %v1702_v21 = vmax.f32 %v1670_v3, 0.0 }
 0x16f   : > { %v1733_v25 = vmax.f32 %v1637_v63, %v1701_v37  ;;  %v1481_v8 = vadd.f32 %v2295_v36, %v2636_v38  ;;  %v3326_v39 = vmax.f32 %v3325_v31, 0.0  ;;  %v1700_v41 = vmax.f32 %v1668_v49, 0.0 }
 0x170   : > { %v1638_v61 = vmax.f32 %v1542_v48, %v3324_v30  ;;  %1889 = vst.msk [vmem:[%s2971_s27 + $0x54] sm:$0xf] %vm1867_vm3, %v2152_v46  ;;  %v1731_v9 = vmax.f32 %v1635_v20, %v1699_v16  ;;  %v1479_v13 = vadd.f32 %v2636_v38, %v1109_v54  ;;  %v1673_v22 = vadd.f32 %v2359_v52, %v2636_v38 }
 0x171   : > { %v1540_v26 = vmax.f32 %v3326_v39, %v1508_v28  ;;  %v2157_v6 = vpack.c.bf16 %v1733_v25, %v1733_v25  ;;  %v1513_v29 = vmax.f32 %v1481_v8, 0.0  ;;  %v3328_v58 = vmax.f32 %v3327_v57, 0.0 }
 0x172   : > { %v1734_v1 = vmax.f32 %v1638_v61, %v1702_v21  ;;  %v2155_v27 = vpack.c.bf16 %v1731_v9, %v1731_v9  ;;  %v1511_v12 = vmax.f32 %v1479_v13, 0.0  ;;  %v1482_v33 = vadd.f32 %v2296_v56, %v2636_v38 }
 0x173   : > { %v1636_v10 = vmax.f32 %v1540_v26, %v3328_v58  ;;  %1894 = vst.msk [vmem:[%s2971_s27 + $0x68] sm:$0xf] %vm1867_vm3, %v2157_v6  ;;  %v3330_v37 = vmax.f32 %v3329_v53, 0.0  ;;  %v1705_v32 = vmax.f32 %v1673_v22, 0.0  ;;  %v1671_v7 = vadd.f32 %v2636_v38, %v1365_v42 }
 0x174   : > { %v2158_v11 = vpack.c.bf16 %v1734_v1, %v1734_v1  ;;  %1892 = vst.msk [vmem:[%s2971_s27 + $0x60] sm:$0xf] %vm1867_vm3, %v2155_v27  ;;  %v3332_v47 = vmax.f32 %v3331_v0, 0.0  ;;  %v1514_v45 = vmax.f32 %v1482_v33, 0.0  ;;  %v1480_v15 = vadd.f32 %v2636_v38, %v1112_v59 }
 0x175   : > { %v1545_v14 = vmax.f32 %v3330_v37, %v1513_v29  ;;  %v1732_v55 = vmax.f32 %v1636_v10, %v1700_v41  ;;  %v3334_v63 = vmax.f32 %v3333_v5, 0.0  ;;  %v1703_v40 = vmax.f32 %v1671_v7, 0.0 }
 0x176   : > { %v1543_v19 = vmax.f32 %v3332_v47, %v1511_v12  ;;  %1895 = vst.msk [vmem:[%s2971_s27 + $0x6c] sm:$0xf] %vm1867_vm3, %v2158_v11  ;;  %v1674_v48 = vadd.f32 %v2360_v60, %v2636_v38  ;;  %v1672_v16 = vadd.f32 %v2636_v38, %v1368_v2  ;;  %v3335_v46 = vmax.f32 %v2922_v62, 0.0 }
 0x177   : > { %v1641_v17 = vmax.f32 %v1545_v14, %v3334_v63  ;;  %v2156_v3 = vpack.c.bf16 %v1732_v55, %v1732_v55  ;;  %v1512_v20 = vmax.f32 %v1480_v15, 0.0  ;;  %v1608_v28 = vmax.f32 %v2959_v44, 0.0 }
 0x178   : > { %v1546_v51 = vmax.f32 %v3335_v46, %v1514_v45  ;;  %v1639_v35 = vmax.f32 %v1543_v19, %v1607_v23  ;;  %v1706_v25 = vmax.f32 %v1674_v48, 0.0  ;;  %v1704_v61 = vmax.f32 %v1672_v16, 0.0 }
 0x179   : > { %v1737_v49 = vmax.f32 %v1641_v17, %v1705_v32  ;;  %1893 = vst.msk [vmem:[%s2971_s27 + $0x64] sm:$0xf] %vm1867_vm3, %v2156_v3  ;;  %v1544_v38 = vmax.f32 %v1448_v34, %v1512_v20 }
 0x17a   : > { %v1735_v36 = vmax.f32 %v1639_v35, %v1703_v40  ;;  %v1642_v62 = vmax.f32 %v1546_v51, %v1610_v43 }
 0x17b   : > { %v2161_v50 = vpack.c.bf16 %v1737_v49, %v1737_v49  ;;  %v1640_v23 = vmax.f32 %v1544_v38, %v1608_v28 }
 0x17c   : > { %v2159_v24 = vpack.c.bf16 %v1735_v36, %v1735_v36  ;;  %v1738_v30 = vmax.f32 %v1642_v62, %v1706_v25 }
 0x17d   : > { %1898 = vst.msk [vmem:[%s2971_s27 + $0x78] sm:$0xf] %vm1867_vm3, %v2161_v50  ;;  %v1736_v21 = vmax.f32 %v1640_v23, %v1704_v61 }
 0x17e   : > { %1896 = vst.msk [vmem:[%s2971_s27 + $0x70] sm:$0xf] %vm1867_vm3, %v2159_v24  ;;  %v2162_v44 = vpack.c.bf16 %v1738_v30, %v1738_v30 }
 0x17f   : > { %v2160_v8 = vpack.c.bf16 %v1736_v21, %v1736_v21 }
 0x180   : > { %1899 = vst.msk [vmem:[%s2971_s27 + $0x7c] sm:$0xf] %vm1867_vm3, %v2162_v44 }
 0x181   : > { %1897 = vst.msk [vmem:[%s2971_s27 + $0x74] sm:$0xf] %vm1867_vm3, %v2160_v8 }
 0x182 PF: > { %s13_s12 = sadd.s32 1, %s2446_s12  }
 0x183   : > { %p10_p4 = scmp.ge.s32.totalorder %s13_s12, 4  }
 0x185   :  { %12 = sbr.rel (!%p10_p4) target bundleno = 1 (0x1), region = 62 }

// kernel: cnn_forward.5
= control target key start
LH: loop header
LB: loop body
LE: loop exit
PB: predicated region body
PF: predicated region fallthrough
CT: control target
= control target key end

     0   :  { %s1601_s12 = smov 0   ;;  %s1845_s0 = inlined_call_operand.vmem [shape: bf16[2,256,288], index: 0, kind: input, shape index: {}]   ;;  %s1846_s1 = inlined_call_operand.vmem [shape: bf16[288,64], index: 1, kind: input, shape index: {}]   ;;  %s1847_s2 = inlined_call_operand.vmem [shape: f32[1,64], index: 2, kind: input, shape index: {}]   ;;  %s1848_s3 = inlined_call_operand.vmem [shape: bf16[2,64,64], index: 3, kind: output, shape index: {}]  }
   0x1 LB: > { %s1190_s13 = sadd.s32 4294967295, %s1579_s12   ;;  %p1194_p0 = scmp.ge.s32.totalorder %s1579_s12, 1  ;;  %s1579_s12 = sphi %s1601_s12, %s13_s12  }
   0x2   : > { %p137_p1 = scmp.lt.s32.totalorder %s1579_s12, 3 }
   0x4   : > { %p138_p2 = pnand %p1194_p0, %p137_p1 }
   0x5   : > { %v1491_v0 = vld [vmem:[%s1846_s1 + $0x40] sm:$0xff] (!%p138_p2)   ;;  %v1493_v2 = vld [vmem:[%s1846_s1 + $0x48] sm:$0xff] (!%p138_p2)   ;;  %p161_p3 = scmp.lt.s32.totalorder (!%p138_p2), %s1190_s13, 1  ;;  %v1495_v4 = vld [vmem:[%s1846_s1 + $0x50] sm:$0xff] (!%p138_p2)   ;;  %vm620_vm0 = vcmask (!%p138_p2), 261120   ;;  %vm1126_vm1 = vcmask (!%p138_p2), 519168  }
   0x6   : > { %141 = sbr.rel (%p138_p2) target bundleno = 359 (0x167), region = 32  ;;  %v1492_v1 = vld [vmem:[%s1846_s1] sm:$0xff] (!%p138_p2)   ;;  %1300 = vmatprep.subr.bf16.mxu0 (!%p138_p2), %v1491_v0  ;;  %1466 = vmatprep.subr.bf16.mxu1 (!%p138_p2), %v1491_v0  ;;  %v1494_v3 = vld [vmem:[%s1846_s1 + $0x8] sm:$0xff] (!%p138_p2)   ;;  %v1496_v5 = vld [vmem:[%s1846_s1 + $0x10] sm:$0xff] (!%p138_p2)  }
   0x7   : > { %1301 = vmatpush3.bf16.msra.mxu0 (!%p138_p2), %v1492_v1  ;;  %1474 = vmatpush3.bf16.msra.mxu1 (!%p138_p2), %v1492_v1  ;;  %v1497_v6 = vld [vmem:[%s1846_s1 + $0x58] sm:$0xff] (!%p138_p2)   ;;  %v1499_v8 = vld [vmem:[%s1846_s1 + $0x60] sm:$0xff] (!%p138_p2)   ;;  %v1501_v10 = vld [vmem:[%s1846_s1 + $0x68] sm:$0xff] (!%p138_p2)  }
   0x8   : > { %1302 = vmatprep.subr.bf16.mxu0 (!%p138_p2), %v1493_v2  ;;  %1467 = vmatprep.subr.bf16.mxu1 (!%p138_p2), %v1493_v2  ;;  %v1498_v7 = vld [vmem:[%s1846_s1 + $0x18] sm:$0xff] (!%p138_p2)   ;;  %v1500_v9 = vld [vmem:[%s1846_s1 + $0x20] sm:$0xff] (!%p138_p2)   ;;  %v1502_v13 = vld [vmem:[%s1846_s1 + $0x28] sm:$0xff] (!%p138_p2)  }
   0x9   : > { %v1503_v14 = vld [vmem:[%s1846_s1 + $0x70] sm:$0xff] (!%p138_p2)   ;;  %v1505_v16 = vld [vmem:[%s1846_s1 + $0x78] sm:$0xff] (!%p138_p2)   ;;  %v1513_v18 = vld [vmem:[%s1846_s1 + $0x80] sm:$0xff] (!%p138_p2)  }
   0xa   : > { %v1504_v15 = vld [vmem:[%s1846_s1 + $0x30] sm:$0xff] (!%p138_p2)   ;;  %v1506_v17 = vld [vmem:[%s1846_s1 + $0x38] sm:$0xff] (!%p138_p2)   ;;  %v1526_v23 = vld [vmem:[%s1846_s1 + $0x88] sm:$0xff] (!%p138_p2)  }
   0xb   : > { %1303 = vmatpush3.bf16.msra.mxu0 (!%p138_p2), %v1494_v3  ;;  %1475 = vmatpush3.bf16.msra.mxu1 (!%p138_p2), %v1494_v3 }
   0xc   : > { %1304 = vmatprep.subr.bf16.mxu0 (!%p138_p2), %v1495_v4  ;;  %1468 = vmatprep.subr.bf16.mxu1 (!%p138_p2), %v1495_v4 }
   0xd   : > { %s1850_s13 = smov (!%p161_p3, %s1190_s13), 1 }
   0xe   : > { %s1482_s28 = smul.u32 384, %s1850_s13  ;;  %s1291_s4 = sshll.u32 %s1850_s13, 5 }
   0xf   : > { %1305 = vmatpush3.bf16.msra.mxu0 %v1496_v5  ;;  %1476 = vmatpush3.bf16.msra.mxu1 %v1496_v5  ;;  %s1809_s13 = scalar_lea.vmem %s1848_s3, %s1291_s4 }
  0x10   : > { %1306 = vmatprep.subr.bf16.mxu0 %v1497_v6  ;;  %1469 = vmatprep.subr.bf16.mxu1 %v1497_v6  ;;  %s1642_s8 = scalar_lea.vmem %s1845_s0, %s1482_s28 }
  0x11   : > { %v1509_v11 = vld [vmem:[%s1642_s8 + $0x4] ss:$12 sps:$4 sm:$0xff]   ;;  %v1507_v19 = vld [vmem:[%s1642_s8] ss:$12 sps:$4 sm:$0xff]   ;;  %v1514_v21 = vld [vmem:[%s1642_s8 + $0x1c] ss:$12 sps:$4 sm:$0xff]  }
  0x12   : > { %v1512_v12 = vld [vmem:[%s1642_s8 + $0x124] ss:$12 sps:$4 sm:$0xff]   ;;  %701 = vmatprep.mubr.bf16.mxu0 %v1509_v11  ;;  %v1510_v20 = vld [vmem:[%s1642_s8 + $0x120] ss:$12 sps:$4 sm:$0xff]   ;;  %v1516_v22 = vld [vmem:[%s1642_s8 + $0x13c] ss:$12 sps:$4 sm:$0xff]  }
  0x13   : > { %1307 = vmatpush3.bf16.msra.mxu0 %v1498_v7  ;;  %1477 = vmatpush3.bf16.msra.mxu1 %v1498_v7  ;;  %v1518_v24 = vld [vmem:[%s1642_s8 + $0x18] ss:$12 sps:$4 sm:$0xff]   ;;  %v1520_v26 = vld [vmem:[%s1642_s8 + $0x34] ss:$12 sps:$4 sm:$0xff]   ;;  %v1524_v28 = vld [vmem:[%s1642_s8 + $0x30] ss:$12 sps:$4 sm:$0xff]  }
  0x14   : > { %1308 = vmatprep.subr.bf16.mxu0 %v1499_v8  ;;  %1470 = vmatprep.subr.bf16.mxu1 %v1499_v8  ;;  %v1519_v25 = vld [vmem:[%s1642_s8 + $0x138] ss:$12 sps:$4 sm:$0xff]   ;;  %v1522_v27 = vld [vmem:[%s1642_s8 + $0x154] ss:$12 sps:$4 sm:$0xff]   ;;  %v1525_v29 = vld [vmem:[%s1642_s8 + $0x150] ss:$12 sps:$4 sm:$0xff]  }
  0x15   : > { %797 = vmatprep.mubr.bf16.mxu1 %v1512_v12  ;;  %v1527_v30 = vld [vmem:[%s1642_s8 + $0x4c] ss:$12 sps:$4 sm:$0xff]   ;;  %v1531_v32 = vld [vmem:[%s1642_s8 + $0x48] ss:$12 sps:$4 sm:$0xff]   ;;  %v1533_v34 = vld [vmem:[%s1642_s8 + $0x64] ss:$12 sps:$4 sm:$0xff]  }
  0x16   : > { %v1529_v31 = vld [vmem:[%s1642_s8 + $0x16c] ss:$12 sps:$4 sm:$0xff]   ;;  %v1532_v33 = vld [vmem:[%s1642_s8 + $0x168] ss:$12 sps:$4 sm:$0xff]   ;;  %v1542_v41 = vld [vmem:[%s1642_s8 + $0x50] ss:$12 sps:$4 sm:$0xff]  }
  0x17   : > { %1309 = vmatpush3.bf16.msra.mxu0 %v1500_v9  ;;  %1478 = vmatpush3.bf16.msra.mxu1 %v1500_v9  ;;  %v1535_v35 = vld [vmem:[%s1642_s8 + $0x8] ss:$12 sps:$4 sm:$0xff]   ;;  %v1536_v36 = vld [vmem:[%s1642_s8 + $0x60] ss:$12 sps:$4 sm:$0xff]   ;;  %v1540_v39 = vld [vmem:[%s1642_s8 + $0x38] ss:$12 sps:$4 sm:$0xff]  }
  0x18   : > { %1310 = vmatprep.subr.bf16.mxu0 %v1501_v10  ;;  %1471 = vmatprep.subr.bf16.mxu1 %v1501_v10  ;;  %v1537_v37 = vld [vmem:[%s1642_s8 + $0x20] ss:$12 sps:$4 sm:$0xff]   ;;  %v1538_v38 = vld [vmem:[%s1642_s8 + $0x7c] ss:$12 sps:$4 sm:$0xff]   ;;  %v1541_v40 = vld [vmem:[%s1642_s8 + $0x78] ss:$12 sps:$4 sm:$0xff]  }
  0x19   : > { %v1543_v42 = vld [vmem:[%s1642_s8 + $0x94] ss:$12 sps:$4 sm:$0xff]   ;;  %v1546_v44 = vld [vmem:[%s1642_s8 + $0x90] ss:$12 sps:$4 sm:$0xff]   ;;  %v1548_v46 = vld [vmem:[%s1642_s8 + $0xac] ss:$12 sps:$4 sm:$0xff]  }
  0x1a   : > { %v1545_v43 = vld [vmem:[%s1642_s8 + $0x68] ss:$12 sps:$4 sm:$0xff]   ;;  %v1547_v45 = vld [vmem:[%s1642_s8 + $0x80] ss:$12 sps:$4 sm:$0xff]   ;;  %v1550_v47 = vld [vmem:[%s1642_s8 + $0x98] ss:$12 sps:$4 sm:$0xff]  }
  0x1b   : > { %1311 = vmatpush3.bf16.msra.mxu0 %v1502_v13  ;;  %1479 = vmatpush3.bf16.msra.mxu1 %v1502_v13  ;;  %v1551_v48 = vld [vmem:[%s1642_s8 + $0xa8] ss:$12 sps:$4 sm:$0xff]   ;;  %v1552_v49 = vld [vmem:[%s1642_s8 + $0xb0] ss:$12 sps:$4 sm:$0xff]   ;;  %v1556_v52 = vld [vmem:[%s1642_s8 + $0xc0] ss:$12 sps:$4 sm:$0xff]  }
  0x1c   : > { %1312 = vmatprep.subr.bf16.mxu0 %v1503_v14  ;;  %1472 = vmatprep.subr.bf16.mxu1 %v1503_v14  ;;  %v1553_v50 = vld [vmem:[%s1642_s8 + $0xc4] ss:$12 sps:$4 sm:$0xff]   ;;  %v1555_v51 = vld [vmem:[%s1642_s8 + $0xc8] ss:$12 sps:$4 sm:$0xff]   ;;  %v1557_v53 = vld [vmem:[%s1642_s8 + $0xe0] ss:$12 sps:$4 sm:$0xff]  }
  0x1d   : > { %v1558_v54 = vld [vmem:[%s1642_s8 + $0xdc] ss:$12 sps:$4 sm:$0xff]   ;;  %v1560_v55 = vld [vmem:[%s1642_s8 + $0xf8] ss:$12 sps:$4 sm:$0xff]   ;;  %v1563_v58 = vld [vmem:[%s1642_s8 + $0xf4] ss:$12 sps:$4 sm:$0xff]  }
  0x1e   : > { %v1561_v56 = vld [vmem:[%s1642_s8 + $0xd8] ss:$12 sps:$4 sm:$0xff]   ;;  %v1562_v57 = vld [vmem:[%s1642_s8 + $0x110] ss:$12 sps:$4 sm:$0xff]   ;;  %v1565_v59 = vld [vmem:[%s1642_s8 + $0x128] ss:$12 sps:$4 sm:$0xff]  }
  0x1f   : > { %1313 = vmatpush3.bf16.msra.mxu0 %v1504_v15  ;;  %1480 = vmatpush3.bf16.msra.mxu1 %v1504_v15  ;;  %v1566_v60 = vld [vmem:[%s1642_s8 + $0xf0] ss:$12 sps:$4 sm:$0xff]   ;;  %v1567_v61 = vld [vmem:[%s1642_s8 + $0x140] ss:$12 sps:$4 sm:$0xff]   ;;  %v1570_v63 = vld [vmem:[%s1642_s8 + $0x158] ss:$12 sps:$4 sm:$0xff]  }
  0x20   : > { %1314 = vmatprep.subr.bf16.mxu0 %v1505_v16  ;;  %1473 = vmatprep.subr.bf16.mxu1 %v1505_v16  ;;  %v1568_v62 = vld [vmem:[%s1642_s8 + $0x10c] ss:$12 sps:$4 sm:$0xff]   ;;  %v1571_v0 = vld [vmem:[%s1642_s8 + $0x108] ss:$12 sps:$4 sm:$0xff]   ;;  %v1572_v1 = vld [vmem:[%s1642_s8 + $0x170] ss:$12 sps:$4 sm:$0xff]  }
  0x23   : > { %1315 = vmatpush3.bf16.msra.mxu0 %v1506_v17  ;;  %1481 = vmatpush3.bf16.msra.mxu1 %v1506_v17 }
  0x24   : > { %1430 = vmatprep.subr.bf16.mxu1 %v1513_v18 }
  0x26   : > { %702 = vmatmul.mubr.bf16.vlgmr.msra.gmra.mrb[0].mxu0 %v1507_v19  ;;  %798 = vmatmul.mubr.bf16.vlgmr.msra.gmra.mrb[0].mxu1 %v1510_v20 }
  0x27   : > { %1431 = vmatpush3.bf16.msra.mxu1 %v1513_v18  ;;  %709 = vmatprep.mubr.bf16.mxu0 %v1514_v21 }
  0x28   : > { %805 = vmatprep.mubr.bf16.mxu1 %v1516_v22  ;;  %1432 = vmatprep.subr.bf16.mxu1 %v1526_v23 }
  0x2b   : > { %1433 = vmatpush3.bf16.msra.mxu1 %v1526_v23 }
  0x2e   : > { %710 = vmatmul.mubr.bf16.gmra.mrb[4].mxu0 %v1518_v24  ;;  %806 = vmatmul.mubr.bf16.gmra.mrb[4].mxu1 %v1519_v25 }
  0x2f   : > { %717 = vmatprep.mubr.bf16.mxu0 %v1520_v26  ;;  %813 = vmatprep.mubr.bf16.mxu1 %v1522_v27 }
  0x36   : > { %718 = vmatmul.mubr.bf16.gmra.mrb[8].mxu0 %v1524_v28  ;;  %814 = vmatmul.mubr.bf16.gmra.mrb[8].mxu1 %v1525_v29 }
  0x37   : > { %725 = vmatprep.mubr.bf16.mxu0 %v1527_v30  ;;  %821 = vmatprep.mubr.bf16.mxu1 %v1529_v31 }
  0x3e   : > { %726 = vmatmul.mubr.bf16.gmra.mrb[12].mxu0 %v1531_v32  ;;  %822 = vmatmul.mubr.bf16.gmra.mrb[12].mxu1 %v1532_v33 }
  0x3f   : > { %733 = vmatprep.mubr.bf16.mxu0 %v1533_v34  ;;  %1434 = vmatprep.mubr.msk.bf16.mxu1 %vm620_vm0, %v1535_v35 }
  0x46   : > { %734 = vmatmul.mubr.bf16.gmra.mrb[16].mxu0 %v1536_v36  ;;  %1435 = vmatmul.mubr.msk.bf16.vlgmr.msra.gmra.mrb[16].mxu1 %vm620_vm0, %v1537_v37 }
  0x47   : > { %741 = vmatprep.mubr.bf16.mxu0 %v1538_v38  ;;  %1438 = vmatprep.mubr.msk.bf16.mxu1 %vm620_vm0, %v1540_v39 }
  0x4e   : > { %742 = vmatmul.mubr.bf16.gmra.mrb[20].mxu0 %v1541_v40  ;;  %1439 = vmatmul.mubr.msk.bf16.gmra.mrb[20].mxu1 %vm620_vm0, %v1542_v41 }
  0x4f   : > { %749 = vmatprep.mubr.bf16.mxu0 %v1543_v42  ;;  %1442 = vmatprep.mubr.msk.bf16.mxu1 %vm620_vm0, %v1545_v43 }
  0x56   : > { %750 = vmatmul.mubr.bf16.gmra.mrb[24].mxu0 %v1546_v44  ;;  %1443 = vmatmul.mubr.msk.bf16.gmra.mrb[24].mxu1 %vm620_vm0, %v1547_v45 }
  0x57   : > { %757 = vmatprep.mubr.bf16.mxu0 %v1548_v46  ;;  %1446 = vmatprep.mubr.msk.bf16.mxu1 %vm620_vm0, %v1550_v47 }
  0x5e   : > { %758 = vmatmul.mubr.bf16.gmra.mrb[28].mxu0 %v1551_v48  ;;  %1447 = vmatmul.mubr.msk.bf16.gmra.mrb[28].mxu1 %vm620_vm0, %v1552_v49 }
  0x5f   : > { %765 = vmatprep.mubr.bf16.mxu0 %v1553_v50  ;;  %1450 = vmatprep.mubr.msk.bf16.mxu1 %vm620_vm0, %v1555_v51 }
  0x66   : > { %766 = vmatmul.mubr.bf16.gmra.mrb[32].mxu0 %v1556_v52  ;;  %1451 = vmatmul.mubr.msk.bf16.gmra.mrb[32].mxu1 %vm620_vm0, %v1557_v53 }
  0x67   : > { %773 = vmatprep.mubr.bf16.mxu0 %v1558_v54  ;;  %1454 = vmatprep.mubr.msk.bf16.mxu1 %vm620_vm0, %v1560_v55 }
  0x6e   : > { %774 = vmatmul.mubr.bf16.gmra.mrb[36].mxu0 %v1561_v56  ;;  %1455 = vmatmul.mubr.msk.bf16.gmra.mrb[36].mxu1 %vm620_vm0, %v1562_v57 }
  0x6f   : > { %781 = vmatprep.mubr.bf16.mxu0 %v1563_v58  ;;  %1458 = vmatprep.mubr.msk.bf16.mxu1 %vm620_vm0, %v1565_v59 }
  0x76   : > { %782 = vmatmul.mubr.bf16.gmra.mrb[40].mxu0 %v1566_v60  ;;  %1459 = vmatmul.mubr.msk.bf16.gmra.mrb[40].mxu1 %vm620_vm0, %v1567_v61 }
  0x77   : > { %789 = vmatprep.mubr.bf16.mxu0 %v1568_v62  ;;  %1462 = vmatprep.mubr.msk.bf16.mxu1 %vm620_vm0, %v1570_v63 }
  0x7e   : > { %790 = vmatmul.mubr.bf16.gmra.mrb[44].mxu0 %v1571_v0  ;;  %1463 = vmatmul.mubr.msk.bf16.gmra.mrb[44].mxu1 %vm620_vm0, %v1572_v1 }
  0xf9   : > { %v1316_v2 = vpop.f32.mrb[0].mxu0  ;;  %v1388_v3 = vpop.f32.mrb[0].mxu1 }
  0xfa   : > { %v1317_v4 = vpop.f32.mrb[1].mxu0  ;;  %v1389_v5 = vpop.f32.mrb[1].mxu1 }
  0xfb   : > { %v1318_v6 = vadd.f32 %v1317_v4, %v1316_v2  ;;  %v1319_v7 = vpop.f32.mrb[2].mxu0  ;;  %v1735_v8 = vadd.f32 %v1389_v5, %v1388_v3  ;;  %v1391_v9 = vpop.f32.mrb[2].mxu1 }
  0xfc   : > { %v1320_v10 = vpop.f32.mrb[3].mxu0  ;;  %v1392_v11 = vpop.f32.mrb[3].mxu1 }
  0xfd   : > { %v1321_v12 = vadd.f32 %v1320_v10, %v1319_v7  ;;  %v1737_v13 = vadd.f32 %v1392_v11, %v1391_v9 }
 0x101   : > { %v1322_v14 = vpop.f32.mrb[4].mxu0  ;;  %v1394_v15 = vpop.f32.mrb[4].mxu1 }
 0x102   : > { %v1323_v16 = vpop.f32.mrb[5].mxu0  ;;  %v1395_v17 = vpop.f32.mrb[5].mxu1 }
 0x103   : > { %v1324_v18 = vadd.f32 %v1323_v16, %v1322_v14  ;;  %v1325_v19 = vpop.f32.mrb[6].mxu0  ;;  %v1739_v20 = vadd.f32 %v1395_v17, %v1394_v15  ;;  %v1397_v21 = vpop.f32.mrb[6].mxu1  ;;  %v1754_v17 = vld [vmem:[%s1847_s2] ss:$0 sm:$0xff] }
 0x104   : > { %v1326_v22 = vpop.f32.mrb[7].mxu0  ;;  %v1398_v23 = vpop.f32.mrb[7].mxu1 }
 0x105   : > { %v1327_v24 = vadd.f32 %v1326_v22, %v1325_v19  ;;  %v1741_v25 = vadd.f32 %v1398_v23, %v1397_v21 }
 0x109   : > { %v1328_v26 = vpop.f32.mrb[8].mxu0  ;;  %v1400_v27 = vpop.f32.mrb[8].mxu1 }
 0x10a   : > { %v1329_v28 = vpop.f32.mrb[9].mxu0  ;;  %v1401_v29 = vpop.f32.mrb[9].mxu1 }
 0x10b   : > { %v1330_v30 = vadd.f32 %v1329_v28, %v1328_v26  ;;  %v1331_v31 = vpop.f32.mrb[10].mxu0  ;;  %v1743_v32 = vadd.f32 %v1401_v29, %v1400_v27  ;;  %v1403_v33 = vpop.f32.mrb[10].mxu1 }
 0x10c   : > { %v1332_v34 = vpop.f32.mrb[11].mxu0  ;;  %v1404_v35 = vpop.f32.mrb[11].mxu1 }
 0x10d   : > { %v1333_v36 = vadd.f32 %v1332_v34, %v1331_v31  ;;  %v1745_v37 = vadd.f32 %v1404_v35, %v1403_v33 }
 0x111   : > { %v1334_v38 = vpop.f32.mrb[12].mxu0  ;;  %v1406_v39 = vpop.f32.mrb[12].mxu1 }
 0x112   : > { %v1335_v40 = vpop.f32.mrb[13].mxu0  ;;  %v1407_v41 = vpop.f32.mrb[13].mxu1 }
 0x113   : > { %v1336_v42 = vadd.f32 %v1335_v40, %v1334_v38  ;;  %v1337_v43 = vpop.f32.mrb[14].mxu0  ;;  %v1747_v44 = vadd.f32 %v1407_v41, %v1406_v39  ;;  %v1409_v45 = vpop.f32.mrb[14].mxu1 }
 0x114   : > { %v1338_v46 = vpop.f32.mrb[15].mxu0  ;;  %v1410_v47 = vpop.f32.mrb[15].mxu1 }
 0x115   : > { %v1339_v48 = vadd.f32 %v1338_v46, %v1337_v43  ;;  %v1749_v49 = vadd.f32 %v1410_v47, %v1409_v45 }
 0x119   : > { %v1340_v50 = vpop.f32.mrb[16].mxu0  ;;  %v1436_v51 = vpop.f32.mrb[16].mxu1 }
 0x11a   : > { %v873_v52 = vadd.f32 %v1436_v51, %v1324_v18  ;;  %v1341_v53 = vpop.f32.mrb[17].mxu0  ;;  %v864_v54 = vpop.f32.mrb[17].mxu1 }
 0x11b   : > { %v1342_v55 = vadd.f32 %v1341_v53, %v1340_v50  ;;  %v865_v56 = vadd.f32 %v1318_v6, %v864_v54  ;;  %v1343_v57 = vpop.f32.mrb[18].mxu0  ;;  %v1437_v58 = vpop.f32.mrb[18].mxu1 }
 0x11c   : > { %v876_v59 = vadd.f32 %v1437_v58, %v1327_v24  ;;  %v1344_v60 = vpop.f32.mrb[19].mxu0  ;;  %v867_v61 = vpop.f32.mrb[19].mxu1  ;;  %v1000_v19 = vadd.f32 %v1754_v17, %v873_v52 }
 0x11d   : > { %v1345_v62 = vadd.f32 %v1344_v60, %v1343_v57  ;;  %v868_v63 = vadd.f32 %v1321_v12, %v867_v61  ;;  %v998_v24 = vadd.f32 %v1754_v17, %v865_v56 }
 0x11e   : > { %v1008_v41 = vmax.f32 %v1000_v19, 0.0 }
 0x11f   : > { %v1006_v45 = vmax.f32 %v998_v24, 0.0 }
 0x121   : > { %v1346_v0 = vpop.f32.mrb[20].mxu0  ;;  %v1440_v1 = vpop.f32.mrb[20].mxu1 }
 0x122   : > { %v889_v2 = vadd.f32 %v1440_v1, %v1336_v42  ;;  %v1347_v3 = vpop.f32.mrb[21].mxu0  ;;  %v880_v4 = vpop.f32.mrb[21].mxu1 }
 0x123   : > { %v1348_v5 = vadd.f32 %v1347_v3, %v1346_v0  ;;  %v881_v7 = vadd.f32 %v1330_v30, %v880_v4  ;;  %v1349_v9 = vpop.f32.mrb[22].mxu0  ;;  %v1441_v10 = vpop.f32.mrb[22].mxu1  ;;  %v1001_v30 = vadd.f32 %v1754_v17, %v876_v59 }
 0x124   : > { %v892_v11 = vadd.f32 %v1441_v10, %v1339_v48  ;;  %v1350_v14 = vpop.f32.mrb[23].mxu0  ;;  %v883_v15 = vpop.f32.mrb[23].mxu1  ;;  %v1004_v3 = vadd.f32 %v1754_v17, %v889_v2 }
 0x125   : > { %v1351_v6 = vadd.f32 %v1350_v14, %v1349_v9  ;;  %v884_v16 = vadd.f32 %v1333_v36, %v883_v15  ;;  %v999_v36 = vadd.f32 %v1754_v17, %v868_v63  ;;  %v1009_v48 = vmax.f32 %v1001_v30, 0.0 }
 0x126   : > { %v1002_v57 = vadd.f32 %v1754_v17, %v881_v7 }
 0x127   : > { %v1007_v52 = vmax.f32 %v999_v36, 0.0  ;;  %v1003_v4 = vadd.f32 %v1754_v17, %v884_v16 }
 0x129   : > { %v1352_v12 = vpop.f32.mrb[24].mxu0  ;;  %v1444_v18 = vpop.f32.mrb[24].mxu1  ;;  %v1011_v2 = vmax.f32 %v1003_v4, 0.0 }
 0x12a   : > { %v905_v21 = vadd.f32 %v1444_v18, %v1348_v5  ;;  %v1353_v22 = vpop.f32.mrb[25].mxu0  ;;  %v896_v23 = vpop.f32.mrb[25].mxu1 }
 0x12b   : > { %v1354_v26 = vadd.f32 %v1353_v22, %v1352_v12  ;;  %v897_v27 = vadd.f32 %v1342_v55, %v896_v23  ;;  %v1355_v28 = vpop.f32.mrb[26].mxu0  ;;  %v1445_v29 = vpop.f32.mrb[26].mxu1  ;;  %v1005_v12 = vadd.f32 %v1754_v17, %v892_v11  ;;  %v1012_v23 = vmax.f32 %v1004_v3, 0.0 }
 0x12c   : > { %v1016_v31 = vadd.f32 %v1754_v17, %v905_v21  ;;  %v908_v33 = vadd.f32 %v1445_v29, %v1351_v6  ;;  %v1356_v34 = vpop.f32.mrb[27].mxu0  ;;  %v899_v35 = vpop.f32.mrb[27].mxu1  ;;  %v1010_v6 = vmax.f32 %v1002_v57, 0.0 }
 0x12d   : > { %v1014_v38 = vadd.f32 %v1754_v17, %v897_v27  ;;  %v1357_v39 = vadd.f32 %v1356_v34, %v1355_v28  ;;  %v900_v40 = vadd.f32 %v1345_v62, %v899_v35  ;;  %v1013_v30 = vmax.f32 %v1005_v12, 0.0 }
 0x12e   : > { %v1024_v42 = vmax.f32 %v1016_v31, 0.0  ;;  %v1017_v43 = vadd.f32 %v1754_v17, %v908_v33 }
 0x12f   : > { %v1022_v46 = vmax.f32 %v1014_v38, 0.0  ;;  %v1015_v47 = vadd.f32 %v1754_v17, %v900_v40 }
 0x130   : > { %v1764_v50 = vadd.f32 %v1024_v42, %v1008_v41  ;;  %v1025_v51 = vmax.f32 %v1017_v43, 0.0 }
 0x131   : > { %v1030_v53 = vadd.f32 %v1022_v46, %v1006_v45  ;;  %v1023_v54 = vmax.f32 %v1015_v47, 0.0  ;;  %v1358_v55 = vpop.f32.mrb[28].mxu0  ;;  %v1448_v56 = vpop.f32.mrb[28].mxu1 }
 0x132   : > { %v1767_v58 = vadd.f32 %v1025_v51, %v1009_v48  ;;  %v1359_v59 = vpop.f32.mrb[29].mxu0  ;;  %v912_v60 = vpop.f32.mrb[29].mxu1 }
 0x133   : > { %v1031_v61 = vadd.f32 %v1023_v54, %v1007_v52  ;;  %v1360_v62 = vadd.f32 %v1359_v59, %v1358_v55  ;;  %v913_v63 = vadd.f32 %v1354_v26, %v912_v60  ;;  %v1361_v0 = vpop.f32.mrb[30].mxu0  ;;  %v1449_v1 = vpop.f32.mrb[30].mxu1 }
 0x134   : > { %v1362_v5 = vpop.f32.mrb[31].mxu0  ;;  %v915_v9 = vpop.f32.mrb[31].mxu1 }
 0x135   : > { %v921_v10 = vadd.f32 %v1448_v56, %v1360_v62  ;;  %v1018_v14 = vadd.f32 %v1754_v17, %v913_v63  ;;  %v1363_v15 = vadd.f32 %v1362_v5, %v1361_v0  ;;  %v916_v7 = vadd.f32 %v1357_v39, %v915_v9 }
 0x137   : > { %v1020_v18 = vadd.f32 %v1754_v17, %v921_v10  ;;  %v1026_v19 = vmax.f32 %v1018_v14, 0.0  ;;  %v924_v21 = vadd.f32 %v1449_v1, %v1363_v15  ;;  %v1019_v22 = vadd.f32 %v1754_v17, %v916_v7 }
 0x139   : > { %v1028_v24 = vmax.f32 %v1020_v18, 0.0  ;;  %v1775_v16 = vadd.f32 %v1026_v19, %v1010_v6  ;;  %v1021_v26 = vadd.f32 %v1754_v17, %v924_v21  ;;  %v1027_v27 = vmax.f32 %v1019_v22, 0.0  ;;  %v1364_v28 = vpop.f32.mrb[32].mxu0  ;;  %v1452_v29 = vpop.f32.mrb[32].mxu1 }
 0x13a   : > { %v1365_v31 = vpop.f32.mrb[33].mxu0  ;;  %v928_v33 = vpop.f32.mrb[33].mxu1 }
 0x13b   : > { %v1778_v11 = vadd.f32 %v1028_v24, %v1012_v23  ;;  %v1029_v34 = vmax.f32 %v1021_v26, 0.0  ;;  %v1780_v35 = vadd.f32 %v1027_v27, %v1011_v2  ;;  %v1366_v36 = vadd.f32 %v1365_v31, %v1364_v28  ;;  %v1367_v38 = vpop.f32.mrb[34].mxu0  ;;  %v1453_v39 = vpop.f32.mrb[34].mxu1 }
 0x13c   : > { %v1368_v40 = vpop.f32.mrb[35].mxu0  ;;  %v931_v41 = vpop.f32.mrb[35].mxu1 }
 0x13d   : > { %v1782_v42 = vadd.f32 %v1029_v34, %v1013_v30  ;;  %v929_v43 = vadd.f32 %v1366_v36, %v928_v33  ;;  %v1369_v45 = vadd.f32 %v1368_v40, %v1367_v38 }
 0x13f   : > { %v1038_v46 = vadd.f32 %v1754_v17, %v929_v43  ;;  %v932_v47 = vadd.f32 %v1369_v45, %v931_v41 }
 0x141   : > { %v1046_v48 = vmax.f32 %v1038_v46, 0.0  ;;  %v1039_v51 = vadd.f32 %v1754_v17, %v932_v47  ;;  %v1370_v52 = vpop.f32.mrb[36].mxu0  ;;  %v1786_v54 = vpop.f32.mrb[36].mxu1 }
 0x142   : > { %v1371_v55 = vpop.f32.mrb[37].mxu0  ;;  %v944_v56 = vpop.f32.mrb[37].mxu1 }
 0x143   : > { %v1054_v57 = vadd.f32 %v1046_v48, %v1030_v53  ;;  %v1047_v59 = vmax.f32 %v1039_v51, 0.0  ;;  %v1372_v60 = vadd.f32 %v1371_v55, %v1370_v52  ;;  %v1373_v62 = vpop.f32.mrb[38].mxu0  ;;  %v1788_v63 = vpop.f32.mrb[38].mxu1 }
 0x144   : > { %v1374_v0 = vpop.f32.mrb[39].mxu0  ;;  %v947_v1 = vpop.f32.mrb[39].mxu1 }
 0x145   : > { %v1055_v3 = vadd.f32 %v1047_v59, %v1031_v61  ;;  %v937_v4 = vadd.f32 %v1452_v29, %v1372_v60  ;;  %v1375_v5 = vadd.f32 %v1374_v0, %v1373_v62 }
 0x147   : > { %v1040_v9 = vadd.f32 %v1754_v17, %v937_v4  ;;  %v940_v10 = vadd.f32 %v1453_v39, %v1375_v5 }
 0x149   : > { %v1048_v14 = vmax.f32 %v1040_v9, 0.0  ;;  %v1041_v15 = vadd.f32 %v1754_v17, %v940_v10  ;;  %v1376_v7 = vpop.f32.mrb[40].mxu0  ;;  %v1460_v6 = vpop.f32.mrb[40].mxu1 }
 0x14a   : > { %v969_v53 = vadd.f32 %v1460_v6, %v1739_v20  ;;  %v1377_v12 = vpop.f32.mrb[41].mxu0  ;;  %v960_v18 = vpop.f32.mrb[41].mxu1 }
 0x14b   : > { %v1049_v19 = vmax.f32 %v1041_v15, 0.0  ;;  %v1056_v21 = vadd.f32 %v1048_v14, %v1764_v50  ;;  %v1378_v22 = vadd.f32 %v1377_v12, %v1376_v7  ;;  %v961_v61 = vadd.f32 %v1735_v8, %v960_v18  ;;  %v1379_v23 = vpop.f32.mrb[42].mxu0  ;;  %v1461_v2 = vpop.f32.mrb[42].mxu1 }
 0x14c   : > { %v1064_v24 = vadd.f32 %v1754_v17, %v969_v53  ;;  %v972_v26 = vadd.f32 %v1461_v2, %v1741_v25  ;;  %v1380_v27 = vpop.f32.mrb[43].mxu0  ;;  %v963_v28 = vpop.f32.mrb[43].mxu1 }
 0x14d   : > { %v945_v29 = vadd.f32 %v1378_v22, %v944_v56  ;;  %v1062_v20 = vadd.f32 %v1754_v17, %v961_v61  ;;  %v1057_v30 = vadd.f32 %v1049_v19, %v1767_v58  ;;  %v1381_v31 = vadd.f32 %v1380_v27, %v1379_v23 }
 0x14e   : > { %v1072_v33 = vmax.f32 %v1064_v24, 0.0  ;;  %v1065_v50 = vadd.f32 %v1754_v17, %v972_v26  ;;  %v964_v8 = vadd.f32 %v1737_v13, %v963_v28 }
 0x14f   : > { %v1042_v34 = vadd.f32 %v1754_v17, %v945_v29  ;;  %v1070_v36 = vmax.f32 %v1062_v20, 0.0  ;;  %v948_v38 = vadd.f32 %v1381_v31, %v947_v1 }
 0x150   : > { %v1080_v39 = vadd.f32 %v1072_v33, %v1056_v21  ;;  %v1073_v25 = vmax.f32 %v1065_v50, 0.0  ;;  %v1063_v40 = vadd.f32 %v1754_v17, %v964_v8 }
 0x151   : > { %v1050_v41 = vmax.f32 %v1042_v34, 0.0  ;;  %v1078_v43 = vadd.f32 %v1070_v36, %v1054_v57  ;;  %v1043_v45 = vadd.f32 %v1754_v17, %v948_v38  ;;  %v1382_v58 = vpop.f32.mrb[44].mxu0  ;;  %v1464_v46 = vpop.f32.mrb[44].mxu1 }
 0x152   : > { %v1088_v47 = vmul.f32 0.25, %v1080_v39  ;;  %v1081_v48 = vadd.f32 %v1073_v25, %v1057_v30  ;;  %v1071_v51 = vmax.f32 %v1063_v40, 0.0  ;;  %v985_v13 = vadd.f32 %v1464_v46, %v1747_v44  ;;  %v1383_v52 = vpop.f32.mrb[45].mxu0  ;;  %v976_v55 = vpop.f32.mrb[45].mxu1 }
 0x153   : > { %v1086_v56 = vmul.f32 0.25, %v1078_v43  ;;  %v1384_v57 = vadd.f32 %v1383_v52, %v1382_v58  ;;  %v977_v59 = vadd.f32 %v1743_v32, %v976_v55  ;;  %v1385_v60 = vpop.f32.mrb[46].mxu0  ;;  %v1465_v62 = vpop.f32.mrb[46].mxu1  ;;  %v1051_v4 = vmax.f32 %v1043_v45, 0.0 }
 0x154   : > { %v1294_v0 = vpack.c.bf16 %v1088_v47, %v1088_v47  ;;  %v1089_v1 = vmul.f32 0.25, %v1081_v48  ;;  %v1079_v44 = vadd.f32 %v1071_v51, %v1055_v3  ;;  %v1386_v5 = vpop.f32.mrb[47].mxu0  ;;  %v979_v9 = vpop.f32.mrb[47].mxu1  ;;  %v1058_v15 = vadd.f32 %v1050_v41, %v1775_v16 }
 0x155   : > { %v1292_v10 = vpack.c.bf16 %v1086_v56, %v1086_v56  ;;  %v953_v14 = vadd.f32 %v1786_v54, %v1384_v57  ;;  %v1066_v7 = vadd.f32 %v1754_v17, %v977_v59  ;;  %v1068_v53 = vadd.f32 %v1754_v17, %v985_v13 }
 0x156   : > { %1129 = vst.msk [vmem:[%s1809_s13 + $0x8] sm:$0xf] %vm1126_vm1, %v1294_v0  ;;  %v1295_v32 = vpack.c.bf16 %v1089_v1, %v1089_v1  ;;  %v1087_v6 = vmul.f32 0.25, %v1079_v44  ;;  %v988_v12 = vadd.f32 %v1465_v62, %v1749_v49  ;;  %v1387_v19 = vadd.f32 %v1386_v5, %v1385_v60 }
 0x157   : > { %1127 = vst.msk [vmem:[%s1809_s13] sm:$0xf] %vm1126_vm1, %v1292_v10  ;;  %v1044_v3 = vadd.f32 %v1754_v17, %v953_v14  ;;  %v1074_v18 = vmax.f32 %v1066_v7, 0.0  ;;  %v980_v54 = vadd.f32 %v1745_v37, %v979_v9  ;;  %v1059_v21 = vadd.f32 %v1051_v4, %v1780_v35 }
 0x158   : > { %1130 = vst.msk [vmem:[%s1809_s13 + $0xc] sm:$0xf] %vm1126_vm1, %v1295_v32  ;;  %v1293_v16 = vpack.c.bf16 %v1087_v6, %v1087_v6  ;;  %v956_v23 = vadd.f32 %v1788_v63, %v1387_v19  ;;  %v1076_v2 = vmax.f32 %v1068_v53, 0.0  ;;  %v1069_v24 = vadd.f32 %v1754_v17, %v988_v12 }
 0x159   : > { %v1052_v22 = vmax.f32 %v1044_v3, 0.0  ;;  %v1082_v61 = vadd.f32 %v1074_v18, %v1058_v15  ;;  %v1067_v49 = vadd.f32 %v1754_v17, %v980_v54 }
 0x15a   : > { %1128 = vst.msk [vmem:[%s1809_s13 + $0x4] sm:$0xf] %vm1126_vm1, %v1293_v16  ;;  %v1045_v27 = vadd.f32 %v1754_v17, %v956_v23  ;;  %v1077_v31 = vmax.f32 %v1069_v24, 0.0 }
 0x15b   : > { %v1060_v26 = vadd.f32 %v1052_v22, %v1778_v11  ;;  %v1090_v37 = vmul.f32 0.25, %v1082_v61  ;;  %v1075_v35 = vmax.f32 %v1067_v49, 0.0 }
 0x15c   : > { %v1053_v20 = vmax.f32 %v1045_v27, 0.0 }
 0x15d   : > { %v1084_v28 = vadd.f32 %v1076_v2, %v1060_v26  ;;  %v1296_v29 = vpack.c.bf16 %v1090_v37, %v1090_v37  ;;  %v1083_v63 = vadd.f32 %v1075_v35, %v1059_v21 }
 0x15e   : > { %v1061_v33 = vadd.f32 %v1053_v20, %v1782_v42 }
 0x15f   : > { %v1092_v30 = vmul.f32 0.25, %v1084_v28  ;;  %1131 = vst.msk [vmem:[%s1809_s13 + $0x10] sm:$0xf] %vm1126_vm1, %v1296_v29  ;;  %v1091_v50 = vmul.f32 0.25, %v1083_v63 }
 0x160   : > { %v1085_v11 = vadd.f32 %v1077_v31, %v1061_v33 }
 0x161   : > { %v1298_v8 = vpack.c.bf16 %v1092_v30, %v1092_v30  ;;  %v1297_v34 = vpack.c.bf16 %v1091_v50, %v1091_v50 }
 0x162   : > { %v1093_v17 = vmul.f32 0.25, %v1085_v11 }
 0x163   : > { %1133 = vst.msk [vmem:[%s1809_s13 + $0x18] sm:$0xf] %vm1126_vm1, %v1298_v8  ;;  %1132 = vst.msk [vmem:[%s1809_s13 + $0x14] sm:$0xf] %vm1126_vm1, %v1297_v34 }
 0x164   : > { %v1299_v36 = vpack.c.bf16 %v1093_v17, %v1093_v17 }
 0x166   : > { %1134 = vst.msk [vmem:[%s1809_s13 + $0x1c] sm:$0xf] %vm1126_vm1, %v1299_v36 }
 0x167 PF: > { %s13_s12 = sadd.s32 1, %s1579_s12  }
 0x168   : > { %p10_p4 = scmp.ge.s32.totalorder %s13_s12, 4  }
 0x16a   :  { %12 = sbr.rel (!%p10_p4) target bundleno = 1 (0x1), region = 62 }

// kernel: cnn_forward.7
= control target key start
LH: loop header
LB: loop body
LE: loop exit
PB: predicated region body
PF: predicated region fallthrough
CT: control target
= control target key end

     0   :  { %v163_v28 = vlaneseq  ;;  %v1134_v36 = vmov 1966171168   ;;  %s1406_s0 = inlined_call_operand.vmem [shape: bf16[2,1024], index: 0, kind: input, shape index: {}]   ;;  %s1407_s1 = inlined_call_operand.vmem [shape: bf16[1024,64], index: 1, kind: input, shape index: {}]   ;;  %s1408_s2 = inlined_call_operand.vmem [shape: f32[1,64], index: 2, kind: input, shape index: {}]   ;;  %s1409_s3 = inlined_call_operand.vmem [shape: bf16[64,10], index: 3, kind: input, shape index: {}]   ;;  %s1410_s4 = inlined_call_operand.vmem [shape: f32[1,10], index: 4, kind: input, shape index: {}]   ;;  %s1411_s5 = inlined_call_operand.hbm [shape: f32[2,10], index: 5, kind: output, shape index: {}]  }
   0x1   :  { %v1041_v0 = vld [vmem:[%s1407_s1 + $0x40] sm:$0xff]   ;;  %v1045_v4 = vld [vmem:[%s1407_s1 + $0x48] sm:$0xff]   ;;  %v1049_v8 = vld [vmem:[%s1407_s1 + $0x50] sm:$0xff]   ;;  %v161_v37 = vunpack.c.l.s4 %v1134_v36 }
   0x2   :  { %v1042_v1 = vld [vmem:[%s1407_s1 + $0xc0] sm:$0xff]   ;;  %932 = vmatprep.subr.bf16.mxu0 %v1041_v0  ;;  %v1046_v5 = vld [vmem:[%s1407_s1 + $0xc8] sm:$0xff]   ;;  %v1050_v9 = vld [vmem:[%s1407_s1 + $0xd0] sm:$0xff]   ;;  %v164_v33 = vshrl.u32 %v163_v28, 7 }
   0x3   :  { %v1043_v2 = vld [vmem:[%s1407_s1] sm:$0xff]   ;;  %954 = vmatprep.subr.bf16.mxu1 %v1042_v1  ;;  %v1047_v6 = vld [vmem:[%s1407_s1 + $0x8] sm:$0xff]   ;;  %v1051_v10 = vld [vmem:[%s1407_s1 + $0x10] sm:$0xff]   ;;  %v162_v40 = vunpack.c.0.s8 %v161_v37 }
   0x4   :  { %v1044_v3 = vld [vmem:[%s1407_s1 + $0x80] sm:$0xff]   ;;  %933 = vmatpush3.bf16.msra.mxu0 %v1043_v2  ;;  %v1048_v7 = vld [vmem:[%s1407_s1 + $0x88] sm:$0xff]   ;;  %v1052_v11 = vld [vmem:[%s1407_s1 + $0x90] sm:$0xff]  }
   0x5   :  { %955 = vmatpush3.bf16.msra.mxu1 %v1044_v3  ;;  %934 = vmatprep.subr.bf16.mxu0 %v1045_v4  ;;  %v1053_v12 = vld [vmem:[%s1407_s1 + $0x58] sm:$0xff]   ;;  %v1057_v16 = vld [vmem:[%s1407_s1 + $0x60] sm:$0xff]   ;;  %v1061_v20 = vld [vmem:[%s1407_s1 + $0x68] sm:$0xff]   ;;  %v1273_v41 = vsub.s32 %v162_v40, %v164_v33 }
   0x6   :  { %956 = vmatprep.subr.bf16.mxu1 %v1046_v5  ;;  %v1054_v13 = vld [vmem:[%s1407_s1 + $0xd8] sm:$0xff]   ;;  %v1058_v17 = vld [vmem:[%s1407_s1 + $0xe0] sm:$0xff]   ;;  %v1062_v21 = vld [vmem:[%s1407_s1 + $0xe8] sm:$0xff]  }
   0x7   :  { %v1055_v14 = vld [vmem:[%s1407_s1 + $0x18] sm:$0xff]   ;;  %v1059_v18 = vld [vmem:[%s1407_s1 + $0x20] sm:$0xff]   ;;  %v1063_v22 = vld [vmem:[%s1407_s1 + $0x28] sm:$0xff]  }
   0x8   :  { %935 = vmatpush3.bf16.msra.mxu0 %v1047_v6  ;;  %v1056_v15 = vld [vmem:[%s1407_s1 + $0x98] sm:$0xff]   ;;  %v1060_v19 = vld [vmem:[%s1407_s1 + $0xa0] sm:$0xff]   ;;  %v1064_v23 = vld [vmem:[%s1407_s1 + $0xa8] sm:$0xff]  }
   0x9   :  { %957 = vmatpush3.bf16.msra.mxu1 %v1048_v7  ;;  %936 = vmatprep.subr.bf16.mxu0 %v1049_v8  ;;  %v1065_v24 = vld [vmem:[%s1407_s1 + $0x70] sm:$0xff]   ;;  %v1069_v29 = vld [vmem:[%s1407_s1 + $0x78] sm:$0xff]   ;;  %v22_v34 = vld [vmem:[%s1406_s0] sm:$0xff] }
   0xa   :  { %958 = vmatprep.subr.bf16.mxu1 %v1050_v9  ;;  %v1066_v25 = vld [vmem:[%s1407_s1 + $0xf0] sm:$0xff]   ;;  %v1070_v30 = vld [vmem:[%s1407_s1 + $0xf8] sm:$0xff]   ;;  %v1074_v35 = vld [vmem:[%s1407_s1 + $0x140] sm:$0xff]   ;;  %v159_v39 = vcombine.high %v22_v34, %v22_v34  ;;  %v166_v42 = vrot.slane %v22_v34, %v1273_v41 }
   0xb   :  { %v1067_v26 = vld [vmem:[%s1407_s1 + $0x30] sm:$0xff]   ;;  %v1071_v31 = vld [vmem:[%s1407_s1 + $0x38] sm:$0xff]   ;;  %v1075_v38 = vld [vmem:[%s1407_s1 + $0x1c0] sm:$0xff]  }
   0xc   :  { %937 = vmatpush3.bf16.msra.mxu0 %v1051_v10  ;;  %v1068_v27 = vld [vmem:[%s1407_s1 + $0xb0] sm:$0xff]   ;;  %v1072_v32 = vld [vmem:[%s1407_s1 + $0xb8] sm:$0xff]   ;;  %v1277_v43 = vrot.slane %v159_v39, %v1273_v41  ;;  %v174_v44 = vcombine.high %v166_v42, %v166_v42  ;;  %v182_v45 = vrot.slane %v166_v42, %v1273_v41  ;;  %v1076_v47 = vld [vmem:[%s1407_s1 + $0x100] sm:$0xff]  }
   0xd   :  { %959 = vmatpush3.bf16.msra.mxu1 %v1052_v11  ;;  %938 = vmatprep.subr.bf16.mxu0 %v1053_v12  ;;  %v1077_v49 = vld [vmem:[%s1407_s1 + $0x180] sm:$0xff]   ;;  %v1078_v52 = vld [vmem:[%s1407_s1 + $0x148] sm:$0xff]   ;;  %v1082_v58 = vld [vmem:[%s1407_s1 + $0x150] sm:$0xff]  }
   0xe   :  { %960 = vmatprep.subr.bf16.mxu1 %v1054_v13  ;;  %v175_v46 = vcombine.high %v1277_v43, %v1277_v43  ;;  %v196_v48 = vrot.slane %v174_v44, %v1273_v41  ;;  %v204_v51 = vcombine.high %v182_v45, %v182_v45  ;;  %v1079_v54 = vld [vmem:[%s1407_s1 + $0x1c8] sm:$0xff]   ;;  %v1083_v59 = vld [vmem:[%s1407_s1 + $0x1d0] sm:$0xff]   ;;  %v1086_v62 = vld [vmem:[%s1407_s1 + $0x158] sm:$0xff]  }
   0xf   :  { %v1080_v55 = vld [vmem:[%s1407_s1 + $0x108] sm:$0xff]   ;;  %v1084_v60 = vld [vmem:[%s1407_s1 + $0x110] sm:$0xff]   ;;  %v1087_v63 = vld [vmem:[%s1407_s1 + $0x1d8] sm:$0xff]  }
  0x10   :  { %939 = vmatpush3.bf16.msra.mxu0 %v1055_v14  ;;  %v203_v50 = vrot.slane %v175_v46, %v1273_v41  ;;  %632 = vmatprep.mubr.bf16.mxu0 %v196_v48  ;;  %v206_v53 = vcombine.high %v196_v48, %v196_v48  ;;  %v1081_v57 = vld [vmem:[%s1407_s1 + $0x188] sm:$0xff]   ;;  %v1085_v61 = vld [vmem:[%s1407_s1 + $0x190] sm:$0xff]   ;;  %v1088_v0 = vld [vmem:[%s1407_s1 + $0x118] sm:$0xff]  }
  0x11   :  { %961 = vmatpush3.bf16.msra.mxu1 %v1056_v15  ;;  %940 = vmatprep.subr.bf16.mxu0 %v1057_v16  ;;  %v1089_v1 = vld [vmem:[%s1407_s1 + $0x198] sm:$0xff]   ;;  %v1090_v2 = vld [vmem:[%s1407_s1 + $0x160] sm:$0xff]   ;;  %v1094_v6 = vld [vmem:[%s1407_s1 + $0x168] sm:$0xff]  }
  0x12   :  { %962 = vmatprep.subr.bf16.mxu1 %v1058_v17  ;;  %v207_v56 = vcombine.high %v203_v50, %v203_v50  ;;  %672 = vmatprep.mubr.bf16.mxu1 %v206_v53  ;;  %v1091_v3 = vld [vmem:[%s1407_s1 + $0x1e0] sm:$0xff]   ;;  %v1095_v7 = vld [vmem:[%s1407_s1 + $0x1e8] sm:$0xff]   ;;  %v1098_v10 = vld [vmem:[%s1407_s1 + $0x170] sm:$0xff]  }
  0x13   :  { %v1092_v4 = vld [vmem:[%s1407_s1 + $0x120] sm:$0xff]   ;;  %v1096_v8 = vld [vmem:[%s1407_s1 + $0x128] sm:$0xff]   ;;  %v1099_v11 = vld [vmem:[%s1407_s1 + $0x1f0] sm:$0xff]  }
  0x14   :  { %941 = vmatpush3.bf16.msra.mxu0 %v1059_v18  ;;  %v1093_v5 = vld [vmem:[%s1407_s1 + $0x1a0] sm:$0xff]   ;;  %v1097_v9 = vld [vmem:[%s1407_s1 + $0x1a8] sm:$0xff]   ;;  %v1100_v12 = vld [vmem:[%s1407_s1 + $0x130] sm:$0xff]  }
  0x15   :  { %963 = vmatpush3.bf16.msra.mxu1 %v1060_v19  ;;  %942 = vmatprep.subr.bf16.mxu0 %v1061_v20 }
  0x16   :  { %964 = vmatprep.subr.bf16.mxu1 %v1062_v21 }
  0x18   :  { %943 = vmatpush3.bf16.msra.mxu0 %v1063_v22 }
  0x19   :  { %965 = vmatpush3.bf16.msra.mxu1 %v1064_v23  ;;  %944 = vmatprep.subr.bf16.mxu0 %v1065_v24 }
  0x1a   :  { %966 = vmatprep.subr.bf16.mxu1 %v1066_v25 }
  0x1c   :  { %945 = vmatpush3.bf16.msra.mxu0 %v1067_v26 }
  0x1d   :  { %967 = vmatpush3.bf16.msra.mxu1 %v1068_v27  ;;  %946 = vmatprep.subr.bf16.mxu0 %v1069_v29 }
  0x1e   :  { %968 = vmatprep.subr.bf16.mxu1 %v1070_v30 }
  0x20   :  { %947 = vmatpush3.bf16.msra.mxu0 %v1071_v31 }
  0x21   :  { %969 = vmatpush3.bf16.msra.mxu1 %v1072_v32  ;;  %976 = vmatprep.subr.bf16.mxu0 %v1074_v35 }
  0x22   :  { %998 = vmatprep.subr.bf16.mxu1 %v1075_v38 }
  0x23   :  { %633 = vmatmul.mubr.bf16.vlgmr.msra.gmra.mrb[0].mxu0 %v182_v45 }
  0x24   :  { %977 = vmatpush3.bf16.msra.mxu0 %v1076_v47  ;;  %673 = vmatmul.mubr.bf16.vlgmr.msra.gmra.mrb[0].mxu1 %v204_v51 }
  0x25   :  { %978 = vmatprep.subr.bf16.mxu0 %v1078_v52  ;;  %999 = vmatpush3.bf16.msra.mxu1 %v1077_v49 }
  0x26   :  { %712 = vmatprep.mubr.bf16.mxu0 %v203_v50  ;;  %1000 = vmatprep.subr.bf16.mxu1 %v1079_v54 }
  0x27   :  { %752 = vmatprep.mubr.bf16.mxu1 %v207_v56 }
  0x28   :  { %979 = vmatpush3.bf16.msra.mxu0 %v1080_v55 }
  0x29   :  { %980 = vmatprep.subr.bf16.mxu0 %v1082_v58  ;;  %1001 = vmatpush3.bf16.msra.mxu1 %v1081_v57 }
  0x2a   :  { %1002 = vmatprep.subr.bf16.mxu1 %v1083_v59 }
  0x2c   :  { %981 = vmatpush3.bf16.msra.mxu0 %v1084_v60 }
  0x2d   :  { %982 = vmatprep.subr.bf16.mxu0 %v1086_v62  ;;  %1003 = vmatpush3.bf16.msra.mxu1 %v1085_v61 }
  0x2e   :  { %1004 = vmatprep.subr.bf16.mxu1 %v1087_v63 }
  0x30   :  { %983 = vmatpush3.bf16.msra.mxu0 %v1088_v0 }
  0x31   :  { %984 = vmatprep.subr.bf16.mxu0 %v1090_v2  ;;  %1005 = vmatpush3.bf16.msra.mxu1 %v1089_v1 }
  0x32   :  { %1006 = vmatprep.subr.bf16.mxu1 %v1091_v3 }
  0x34   :  { %985 = vmatpush3.bf16.msra.mxu0 %v1092_v4 }
  0x35   :  { %986 = vmatprep.subr.bf16.mxu0 %v1094_v6  ;;  %1007 = vmatpush3.bf16.msra.mxu1 %v1093_v5 }
  0x36   :  { %1008 = vmatprep.subr.bf16.mxu1 %v1095_v7 }
  0x38   :  { %987 = vmatpush3.bf16.msra.mxu0 %v1096_v8 }
  0x39   :  { %10 = vsyncpa [#allocation3], 0  ;;  %988 = vmatprep.subr.bf16.mxu0 %v1098_v10  ;;  %v1102_v13 = vld [vmem:[%s1407_s1 + $0x178] sm:$0xff]   ;;  %1009 = vmatpush3.bf16.msra.mxu1 %v1097_v9  ;;  %v1101_v14 = vld [vmem:[%s1407_s1 + $0x1b0] sm:$0xff]   ;;  %v189_v17 = vrot.slane %v1277_v43, %v1273_v41  ;;  %v1135_v21 = vmov 0.0   ;;  %vm1136_vm0 = vmmov 0  }
  0x3a   :  { %1010 = vmatprep.subr.bf16.mxu1 %v1099_v11  ;;  %v1103_v15 = vld [vmem:[%s1407_s1 + $0x1f8] sm:$0xff]   ;;  %v1106_v20 = vld [vmem:[%s1409_s3] sm:$0xff]   ;;  %v1107_v22 = vld [vmem:[%s1409_s3 + $0x8] sm:$0xff]   ;;  %vm801_vm1 = vcmask 523264   ;;  %s1137_s29 = smov [#allocation2]   ;;  %vm845_vm2 = vcmask 74752  }
  0x3b   :  { %v1104_v16 = vld [vmem:[%s1407_s1 + $0x138] sm:$0xff]   ;;  %v205_v19 = vcombine.high %v189_v17, %v189_v17  ;;  %v1108_v23 = vld [vmem:[%s1409_s3 + $0x10] sm:$0xff]   ;;  %v861_v26 = vld [vmem:[%s1408_s2] ss:$0 sm:$0xff]  ;;  %s853_s30 = sshll.u32 %s1137_s29, 4  ;;  %s854_s30 = int_to_ptr.vmem [resolvable:$true] %s853_s30 }
  0x3c   :  { %989 = vmatpush3.bf16.msra.mxu0 %v1100_v12  ;;  %v1105_v18 = vld [vmem:[%s1407_s1 + $0x1b8] sm:$0xff]   ;;  %v926_v52 = vld [vmem:[%s1410_s4] ss:$0 sm:$0xff]  ;;  %s1110_s6 = scalar_lea.vmem %s854_s30, 32  ;;  %p1115_p1 = scmp.lt.s32.totalorder %s854_s30, %s854_s30 }
  0x3d   :  { %990 = vmatprep.subr.bf16.mxu0 %v1102_v13  ;;  %1011 = vmatpush3.bf16.msra.mxu1 %v1101_v14  ;;  %v1109_v24 = vld [vmem:[%s1409_s3 + $0x18] sm:$0xff]   ;;  %p1111_p0 = scmp.ne.s32.totalorder %s854_s30, %s1110_s6  ;;  %p1116_p2 = scmp.lt.s32.totalorder %s1110_s6, %s1110_s6 }
  0x3e   :  { %1012 = vmatprep.subr.bf16.mxu1 %v1103_v15 }
  0x3f   :  { %p1117_p3 = por %p1116_p2, %p1115_p1 }
  0x40   :  { %991 = vmatpush3.bf16.msra.mxu0 %v1104_v16 }
  0x41   :  { %1013 = vmatpush3.bf16.msra.mxu1 %v1105_v18  ;;  %1025 = vmatprep.subr.bf16.mxu0 %v1135_v21  ;;  %p1118_p4 = pnand %p1117_p3, %p1111_p0 }
  0x43   :  { %713 = vmatmul.mubr.bf16.vlgmr.msra.gmra.mrb[4].mxu0 %v189_v17 }
  0x44   :  { %753 = vmatmul.mubr.bf16.vlgmr.msra.gmra.mrb[4].mxu1 %v205_v19  ;;  %1026 = vmatpush3.bf16.msra.mxu0 %v1106_v20 }
  0x45   :  { %1027 = vmatprep.subr.bf16.mxu0 %v1135_v21  ;;  %1033 = vmatprep.mubr.msk.bf16.mxu0 %vm1136_vm0, %v1135_v21 }
  0x48   :  { %1028 = vmatpush3.bf16.msra.mxu0 %v1107_v22 }
  0x49   :  { %1029 = vmatprep.subr.bf16.mxu0 %v1135_v21 }
  0x4c   :  { %1030 = vmatpush3.bf16.msra.mxu0 %v1108_v23 }
  0x4d   :  { %1031 = vmatprep.subr.bf16.mxu0 %v1135_v21 }
  0x50   :  { %1032 = vmatpush3.bf16.msra.mxu0 %v1109_v24 }
  0xf6   :  { %v948_v25 = vpop.f32.mrb[0].mxu0 }
  0xf7   :  { %v949_v27 = vpop.f32.mrb[1].mxu0  ;;  %v970_v28 = vpop.f32.mrb[0].mxu1 }
  0xf8   :  { %v950_v29 = vadd.f32 %v949_v27, %v948_v25  ;;  %v951_v30 = vpop.f32.mrb[2].mxu0  ;;  %v971_v31 = vpop.f32.mrb[1].mxu1 }
  0xf9   :  { %v952_v32 = vpop.f32.mrb[3].mxu0  ;;  %v972_v34 = vadd.f32 %v971_v31, %v970_v28  ;;  %v973_v35 = vpop.f32.mrb[2].mxu1 }
  0xfa   :  { %v635_v33 = vadd.f32 %v950_v29, %v861_v26  ;;  %v974_v36 = vpop.f32.mrb[3].mxu1 }
  0xfc   :  { %v675_v37 = vadd.f32 %v972_v34, %v635_v33 }
 0x116   :  { %v992_v38 = vpop.f32.mrb[4].mxu0 }
 0x117   :  { %v993_v39 = vpop.f32.mrb[5].mxu0  ;;  %v1014_v40 = vpop.f32.mrb[4].mxu1 }
 0x118   :  { %v994_v41 = vadd.f32 %v993_v39, %v992_v38  ;;  %v995_v42 = vpop.f32.mrb[6].mxu0  ;;  %v1015_v43 = vpop.f32.mrb[5].mxu1 }
 0x119   :  { %v996_v44 = vpop.f32.mrb[7].mxu0  ;;  %v1016_v46 = vadd.f32 %v1015_v43, %v1014_v40  ;;  %v1017_v47 = vpop.f32.mrb[6].mxu1 }
 0x11a   :  { %v715_v45 = vadd.f32 %v994_v41, %v675_v37  ;;  %v1018_v48 = vpop.f32.mrb[7].mxu1 }
 0x11c   :  { %v755_v49 = vadd.f32 %v1016_v46, %v715_v45 }
 0x11e   :  { %v760_v50 = vmax.f32 %v755_v49, 0.0 }
 0x120   :  { %v761_v51 = vpack.c.bf16 %v760_v50, %v760_v50 }
 0x122   :  { %1034 = vmatmul.mubr.msk.bf16.vlgmr.msra.gmra.mrb[8].mxu0 %vm801_vm1, %v761_v51 }
 0x1f5   :  { %v839_v53 = vpop.f32.mrb[8].mxu0 }
 0x1f6   :  { %v840_v54 = vadd.f32 %v926_v52, %v839_v53  ;;  %v1035_v55 = vpop.f32.mrb[9].mxu0 }
 0x1f7   :  { %v842_v56 = vpop.f32.mrb[10].mxu0 }
 0x1f8   :  { %v1036_v57 = vpop.f32.mrb[11].mxu0  ;;  %846 = vst.msk [vmem:[#allocation2] sm:$0x3] %vm845_vm2, %v840_v54 }
 0x1f9   :  { %1121 = shalt.err (!%p1118_p4)
}
 0x1fa   :  { %s1122_s4 = scalar_lea.hbm %s1411_s5, 32 }
 0x1fb   :  { %p1123_p5 = scmp.ne.s32.totalorder %s1411_s5, %s1122_s4  ;;  %p1126_p6 = scmp.lt.u32.totalorder %s1122_s4, %s1411_s5 }
 0x1fd   :  { %p1128_p7 = pnand %p1126_p6, %p1123_p5 }
 0x1ff   :  { %1131 = shalt.err (!%p1128_p7)
}
 0x200   :  { %856 = dma.vmem_to_hbm [thread:$0]  %s854_s30, 32, %s1411_s5, [#allocation3]  }
 0x201   :  { %1132 = dma.done.wait [#allocation3], 32  }
 0x202   :  { %1133 = vsyncadd [#allocation3], 4294967264 }
 0x203   :  { %860 = vsyncpa [#allocation3], 1 }

// kernel: cnn_forward.6
= control target key start
LH: loop header
LB: loop body
LE: loop exit
PB: predicated region body
PF: predicated region fallthrough
CT: control target
= control target key end

     0   :  { %s1176_s12 = smov 0   ;;  %s1334_s0 = inlined_call_operand.vmem [shape: bf16[2,64,576], index: 0, kind: input, shape index: {}]   ;;  %s1335_s1 = inlined_call_operand.vmem [shape: bf16[576,64], index: 1, kind: input, shape index: {}]   ;;  %s1336_s2 = inlined_call_operand.vmem [shape: f32[1,64], index: 2, kind: input, shape index: {}]   ;;  %s1337_s3 = inlined_call_operand.vmem [shape: bf16[2,16,64], index: 3, kind: output, shape index: {}]  }
   0x1 LB: > { %s887_s13 = sadd.s32 4294967295, %s1154_s12   ;;  %p891_p0 = scmp.ge.s32.totalorder %s1154_s12, 1  ;;  %s1154_s12 = sphi %s1176_s12, %s13_s12  }
   0x2   : > { %p137_p1 = scmp.lt.s32.totalorder %s1154_s12, 3 }
   0x4   : > { %p138_p2 = pnand %p891_p0, %p137_p1 }
   0x5   : > { %v1084_v0 = vld [vmem:[%s1335_s1 + $0x40] sm:$0xff] (!%p138_p2)   ;;  %v1088_v4 = vld [vmem:[%s1335_s1 + $0x48] sm:$0xff] (!%p138_p2)   ;;  %v1092_v8 = vld [vmem:[%s1335_s1 + $0x50] sm:$0xff] (!%p138_p2)   ;;  %p161_p3 = scmp.lt.s32.totalorder (!%p138_p2), %s887_s13, 1  ;;  %vm584_vm0 = vcmask (!%p138_p2), 523264   ;;  %vm829_vm1 = vcmask (!%p138_p2), 519168  }
   0x6   : > { %141 = sbr.rel (%p138_p2) target bundleno = 301 (0x12d), region = 32  ;;  %v1085_v1 = vld [vmem:[%s1335_s1 + $0xc0] sm:$0xff] (!%p138_p2)   ;;  %963 = vmatprep.subr.bf16.mxu0 (!%p138_p2), %v1084_v0  ;;  %v1089_v5 = vld [vmem:[%s1335_s1 + $0xc8] sm:$0xff] (!%p138_p2)   ;;  %v1093_v9 = vld [vmem:[%s1335_s1 + $0xd0] sm:$0xff] (!%p138_p2)  }
   0x7   : > { %v1086_v2 = vld [vmem:[%s1335_s1] sm:$0xff] (!%p138_p2)   ;;  %1003 = vmatprep.subr.bf16.mxu1 (!%p138_p2), %v1085_v1  ;;  %v1090_v6 = vld [vmem:[%s1335_s1 + $0x8] sm:$0xff] (!%p138_p2)   ;;  %v1094_v10 = vld [vmem:[%s1335_s1 + $0x10] sm:$0xff] (!%p138_p2)  }
   0x8   : > { %v1087_v3 = vld [vmem:[%s1335_s1 + $0x80] sm:$0xff] (!%p138_p2)   ;;  %964 = vmatpush3.bf16.msra.mxu0 (!%p138_p2), %v1086_v2  ;;  %v1091_v7 = vld [vmem:[%s1335_s1 + $0x88] sm:$0xff] (!%p138_p2)   ;;  %v1095_v11 = vld [vmem:[%s1335_s1 + $0x90] sm:$0xff] (!%p138_p2)  }
   0x9   : > { %1004 = vmatpush3.bf16.msra.mxu1 (!%p138_p2), %v1087_v3  ;;  %965 = vmatprep.subr.bf16.mxu0 (!%p138_p2), %v1088_v4  ;;  %v1096_v12 = vld [vmem:[%s1335_s1 + $0x58] sm:$0xff] (!%p138_p2)   ;;  %v1100_v16 = vld [vmem:[%s1335_s1 + $0x60] sm:$0xff] (!%p138_p2)   ;;  %v1104_v20 = vld [vmem:[%s1335_s1 + $0x68] sm:$0xff] (!%p138_p2)  }
   0xa   : > { %1005 = vmatprep.subr.bf16.mxu1 (!%p138_p2), %v1089_v5  ;;  %v1097_v13 = vld [vmem:[%s1335_s1 + $0xd8] sm:$0xff] (!%p138_p2)   ;;  %v1101_v17 = vld [vmem:[%s1335_s1 + $0xe0] sm:$0xff] (!%p138_p2)   ;;  %v1105_v21 = vld [vmem:[%s1335_s1 + $0xe8] sm:$0xff] (!%p138_p2)  }
   0xb   : > { %v1098_v14 = vld [vmem:[%s1335_s1 + $0x18] sm:$0xff] (!%p138_p2)   ;;  %v1102_v18 = vld [vmem:[%s1335_s1 + $0x20] sm:$0xff] (!%p138_p2)   ;;  %v1106_v22 = vld [vmem:[%s1335_s1 + $0x28] sm:$0xff] (!%p138_p2)  }
   0xc   : > { %966 = vmatpush3.bf16.msra.mxu0 (!%p138_p2), %v1090_v6  ;;  %v1099_v15 = vld [vmem:[%s1335_s1 + $0x98] sm:$0xff] (!%p138_p2)   ;;  %v1103_v19 = vld [vmem:[%s1335_s1 + $0xa0] sm:$0xff] (!%p138_p2)   ;;  %v1107_v23 = vld [vmem:[%s1335_s1 + $0xa8] sm:$0xff] (!%p138_p2)  }
   0xd   : > { %1006 = vmatpush3.bf16.msra.mxu1 %v1091_v7  ;;  %967 = vmatprep.subr.bf16.mxu0 %v1092_v8  ;;  %s1339_s13 = smov (!%p161_p3, %s887_s13), 1  ;;  %v1108_v24 = vld [vmem:[%s1335_s1 + $0x70] sm:$0xff]   ;;  %v1112_v28 = vld [vmem:[%s1335_s1 + $0x78] sm:$0xff]   ;;  %v1122_v36 = vld [vmem:[%s1335_s1 + $0x100] sm:$0xff]  }
   0xe   : > { %1007 = vmatprep.subr.bf16.mxu1 %v1093_v9  ;;  %v1109_v25 = vld [vmem:[%s1335_s1 + $0xf0] sm:$0xff]   ;;  %s1075_s16 = smul.u32 160, %s1339_s13  ;;  %v1113_v29 = vld [vmem:[%s1335_s1 + $0xf8] sm:$0xff]   ;;  %v1129_v39 = vld [vmem:[%s1335_s1 + $0x108] sm:$0xff]   ;;  %s960_s17 = sshll.u32 %s1339_s13, 3 }
   0xf   : > { %v1110_v26 = vld [vmem:[%s1335_s1 + $0x30] sm:$0xff]   ;;  %v1114_v30 = vld [vmem:[%s1335_s1 + $0x38] sm:$0xff]   ;;  %s170_s20 = scalar_lea.vmem %s1337_s3, %s960_s17 }
  0x10   : > { %968 = vmatpush3.bf16.msra.mxu0 %v1094_v10  ;;  %v1111_v27 = vld [vmem:[%s1335_s1 + $0xb0] sm:$0xff]   ;;  %s1284_s27 = scalar_lea.vmem %s1334_s0, %s1075_s16  ;;  %v1115_v31 = vld [vmem:[%s1335_s1 + $0xb8] sm:$0xff]  }
  0x11   : > { %1008 = vmatpush3.bf16.msra.mxu1 %v1095_v11  ;;  %969 = vmatprep.subr.bf16.mxu0 %v1096_v12  ;;  %v1116_v32 = vld [vmem:[%s1284_s27] ss:$20 sps:$4 sm:$0xff]   ;;  %v1118_v33 = vld [vmem:[%s1284_s27 + $0x4] ss:$20 sps:$4 sm:$0xff]   ;;  %v1119_v34 = vld [vmem:[%s1284_s27 + $0x8] ss:$20 sps:$4 sm:$0xff]  }
  0x12   : > { %1009 = vmatprep.subr.bf16.mxu1 %v1097_v13  ;;  %v1121_v35 = vld [vmem:[%s1284_s27 + $0xc] ss:$20 sps:$4 sm:$0xff]   ;;  %629 = vmatprep.mubr.bf16.mxu0 %v1118_v33  ;;  %v1125_v38 = vld [vmem:[%s1284_s27 + $0x34] ss:$20 sps:$4 sm:$0xff]   ;;  %v1128_v41 = vld [vmem:[%s1284_s27 + $0x30] ss:$20 sps:$4 sm:$0xff]  }
  0x13   : > { %694 = vmatprep.mubr.bf16.mxu1 %v1121_v35  ;;  %v1123_v37 = vld [vmem:[%s1284_s27 + $0x2c] ss:$20 sps:$4 sm:$0xff]   ;;  %v1127_v40 = vld [vmem:[%s1284_s27 + $0x28] ss:$20 sps:$4 sm:$0xff]   ;;  %v1136_v44 = vld [vmem:[%s1335_s1 + $0x110] sm:$0xff]  }
  0x14   : > { %970 = vmatpush3.bf16.msra.mxu0 %v1098_v14  ;;  %v1130_v42 = vld [vmem:[%s1284_s27 + $0x54] ss:$20 sps:$4 sm:$0xff]   ;;  %v1132_v43 = vld [vmem:[%s1284_s27 + $0x5c] ss:$20 sps:$4 sm:$0xff]   ;;  %v1135_v47 = vld [vmem:[%s1284_s27 + $0x58] ss:$20 sps:$4 sm:$0xff]  }
  0x15   : > { %1010 = vmatpush3.bf16.msra.mxu1 %v1099_v15  ;;  %971 = vmatprep.subr.bf16.mxu0 %v1100_v16  ;;  %v1143_v45 = vld [vmem:[%s1335_s1 + $0x118] sm:$0xff]   ;;  %v1134_v46 = vld [vmem:[%s1284_s27 + $0x50] ss:$20 sps:$4 sm:$0xff]   ;;  %v1142_v51 = vld [vmem:[%s1284_s27 + $0x80] ss:$20 sps:$4 sm:$0xff]  }
  0x16   : > { %1011 = vmatprep.subr.bf16.mxu1 %v1101_v17  ;;  %v1137_v48 = vld [vmem:[%s1284_s27 + $0x7c] ss:$20 sps:$4 sm:$0xff]   ;;  %v1139_v49 = vld [vmem:[%s1284_s27 + $0x84] ss:$20 sps:$4 sm:$0xff]   ;;  %v1145_v53 = vld [vmem:[%s1284_s27 + $0x60] ss:$20 sps:$4 sm:$0xff]  }
  0x17   : > { %v1141_v50 = vld [vmem:[%s1284_s27 + $0x78] ss:$20 sps:$4 sm:$0xff]   ;;  %v1144_v52 = vld [vmem:[%s1284_s27 + $0x10] ss:$20 sps:$4 sm:$0xff]   ;;  %v1147_v55 = vld [vmem:[%s1284_s27 + $0x88] ss:$20 sps:$4 sm:$0xff]  }
  0x18   : > { %972 = vmatpush3.bf16.msra.mxu0 %v1102_v18  ;;  %v1146_v54 = vld [vmem:[%s1284_s27 + $0x38] ss:$20 sps:$4 sm:$0xff]  }
  0x19   : > { %1012 = vmatpush3.bf16.msra.mxu1 %v1103_v19  ;;  %973 = vmatprep.subr.bf16.mxu0 %v1104_v20 }
  0x1a   : > { %1013 = vmatprep.subr.bf16.mxu1 %v1105_v21 }
  0x1c   : > { %974 = vmatpush3.bf16.msra.mxu0 %v1106_v22 }
  0x1d   : > { %1014 = vmatpush3.bf16.msra.mxu1 %v1107_v23  ;;  %975 = vmatprep.subr.bf16.mxu0 %v1108_v24 }
  0x1e   : > { %1015 = vmatprep.subr.bf16.mxu1 %v1109_v25 }
  0x20   : > { %976 = vmatpush3.bf16.msra.mxu0 %v1110_v26 }
  0x21   : > { %1016 = vmatpush3.bf16.msra.mxu1 %v1111_v27  ;;  %977 = vmatprep.subr.bf16.mxu0 %v1112_v28 }
  0x22   : > { %1017 = vmatprep.subr.bf16.mxu1 %v1113_v29 }
  0x24   : > { %978 = vmatpush3.bf16.msra.mxu0 %v1114_v30 }
  0x25   : > { %1018 = vmatpush3.bf16.msra.mxu1 %v1115_v31  ;;  %1051 = vmatprep.subr.bf16.mxu0 %v1122_v36 }
  0x26   : > { %1067 = vmatprep.subr.bf16.mxu1 %v1122_v36 }
  0x27   : > { %630 = vmatmul.mubr.bf16.vlgmr.msra.gmra.mrb[0].mxu0 %v1116_v32 }
  0x28   : > { %695 = vmatmul.mubr.bf16.vlgmr.msra.gmra.mrb[0].mxu1 %v1119_v34  ;;  %1052 = vmatpush3.bf16.msra.mxu0 %v1122_v36 }
  0x29   : > { %1071 = vmatpush3.bf16.msra.mxu1 %v1122_v36  ;;  %637 = vmatprep.mubr.bf16.mxu0 %v1123_v37 }
  0x2a   : > { %702 = vmatprep.mubr.bf16.mxu1 %v1125_v38  ;;  %1053 = vmatprep.subr.bf16.mxu0 %v1129_v39 }
  0x2b   : > { %1068 = vmatprep.subr.bf16.mxu1 %v1129_v39 }
  0x2c   : > { %1054 = vmatpush3.bf16.msra.mxu0 %v1129_v39 }
  0x2d   : > { %1072 = vmatpush3.bf16.msra.mxu1 %v1129_v39  ;;  %1055 = vmatprep.subr.bf16.mxu0 %v1136_v44 }
  0x2e   : > { %1069 = vmatprep.subr.bf16.mxu1 %v1136_v44 }
  0x2f   : > { %638 = vmatmul.mubr.bf16.gmra.mrb[4].mxu0 %v1127_v40 }
  0x30   : > { %703 = vmatmul.mubr.bf16.gmra.mrb[4].mxu1 %v1128_v41  ;;  %645 = vmatprep.mubr.bf16.mxu0 %v1130_v42 }
  0x31   : > { %710 = vmatprep.mubr.bf16.mxu1 %v1132_v43  ;;  %1056 = vmatpush3.bf16.msra.mxu0 %v1136_v44 }
  0x32   : > { %1073 = vmatpush3.bf16.msra.mxu1 %v1136_v44  ;;  %1057 = vmatprep.subr.bf16.mxu0 %v1143_v45 }
  0x33   : > { %1070 = vmatprep.subr.bf16.mxu1 %v1143_v45 }
  0x35   : > { %1058 = vmatpush3.bf16.msra.mxu0 %v1143_v45 }
  0x36   : > { %1074 = vmatpush3.bf16.msra.mxu1 %v1143_v45 }
  0x37   : > { %646 = vmatmul.mubr.bf16.gmra.mrb[8].mxu0 %v1134_v46 }
  0x38   : > { %711 = vmatmul.mubr.bf16.gmra.mrb[8].mxu1 %v1135_v47  ;;  %653 = vmatprep.mubr.bf16.mxu0 %v1137_v48 }
  0x39   : > { %718 = vmatprep.mubr.bf16.mxu1 %v1139_v49  ;;  %v955_v49 = vld [vmem:[%s1336_s2] ss:$0 sm:$0xff] }
  0x3f   : > { %654 = vmatmul.mubr.bf16.gmra.mrb[12].mxu0 %v1141_v50 }
  0x40   : > { %719 = vmatmul.mubr.bf16.gmra.mrb[12].mxu1 %v1142_v51  ;;  %1059 = vmatprep.mubr.msk.bf16.mxu0 %vm584_vm0, %v1144_v52 }
  0x41   : > { %1063 = vmatprep.mubr.msk.bf16.mxu1 %vm584_vm0, %v1145_v53 }
  0x47   : > { %1060 = vmatmul.mubr.msk.bf16.vlgmr.msra.gmra.mrb[16].mxu0 %vm584_vm0, %v1146_v54 }
  0x48   : > { %1064 = vmatmul.mubr.msk.bf16.vlgmr.msra.gmra.mrb[16].mxu1 %vm584_vm0, %v1147_v55 }
  0xfa   : > { %v979_v56 = vpop.f32.mrb[0].mxu0 }
  0xfb   : > { %v1019_v57 = vpop.f32.mrb[0].mxu1  ;;  %v980_v58 = vpop.f32.mrb[1].mxu0 }
  0xfc   : > { %v981_v59 = vadd.f32 %v980_v58, %v979_v56  ;;  %v1020_v60 = vpop.f32.mrb[1].mxu1  ;;  %v982_v61 = vpop.f32.mrb[2].mxu0 }
  0xfd   : > { %v1021_v62 = vadd.f32 %v1020_v60, %v1019_v57  ;;  %v1022_v63 = vpop.f32.mrb[2].mxu1  ;;  %v983_v0 = vpop.f32.mrb[3].mxu0 }
  0xfe   : > { %v984_v1 = vadd.f32 %v983_v0, %v982_v61  ;;  %v1023_v2 = vpop.f32.mrb[3].mxu1 }
  0xff   : > { %v1024_v3 = vadd.f32 %v1023_v2, %v1022_v63  ;;  %v697_v4 = vadd.f32 %v1021_v62, %v981_v59 }
 0x101   : > { %v700_v5 = vadd.f32 %v1024_v3, %v984_v1 }
 0x102   : > { %v985_v6 = vpop.f32.mrb[4].mxu0 }
 0x103   : > { %v1025_v7 = vpop.f32.mrb[4].mxu1  ;;  %v986_v8 = vpop.f32.mrb[5].mxu0 }
 0x104   : > { %v987_v9 = vadd.f32 %v986_v8, %v985_v6  ;;  %v1026_v10 = vpop.f32.mrb[5].mxu1  ;;  %v988_v11 = vpop.f32.mrb[6].mxu0 }
 0x105   : > { %v1027_v12 = vadd.f32 %v1026_v10, %v1025_v7  ;;  %v1028_v13 = vpop.f32.mrb[6].mxu1  ;;  %v989_v14 = vpop.f32.mrb[7].mxu0 }
 0x106   : > { %v990_v15 = vadd.f32 %v989_v14, %v988_v11  ;;  %v1029_v16 = vpop.f32.mrb[7].mxu1 }
 0x107   : > { %v1030_v17 = vadd.f32 %v1029_v16, %v1028_v13  ;;  %v705_v18 = vadd.f32 %v1027_v12, %v987_v9 }
 0x109   : > { %v708_v19 = vadd.f32 %v1030_v17, %v990_v15 }
 0x10a   : > { %v991_v20 = vpop.f32.mrb[8].mxu0 }
 0x10b   : > { %v1031_v21 = vpop.f32.mrb[8].mxu1  ;;  %v992_v22 = vpop.f32.mrb[9].mxu0 }
 0x10c   : > { %v993_v23 = vadd.f32 %v992_v22, %v991_v20  ;;  %v1032_v24 = vpop.f32.mrb[9].mxu1  ;;  %v994_v25 = vpop.f32.mrb[10].mxu0 }
 0x10d   : > { %v1033_v26 = vadd.f32 %v1032_v24, %v1031_v21  ;;  %v1034_v27 = vpop.f32.mrb[10].mxu1  ;;  %v995_v28 = vpop.f32.mrb[11].mxu0 }
 0x10e   : > { %v996_v29 = vadd.f32 %v995_v28, %v994_v25  ;;  %v1035_v30 = vpop.f32.mrb[11].mxu1 }
 0x10f   : > { %v1036_v31 = vadd.f32 %v1035_v30, %v1034_v27  ;;  %v713_v32 = vadd.f32 %v1033_v26, %v993_v23 }
 0x111   : > { %v716_v33 = vadd.f32 %v1036_v31, %v996_v29 }
 0x112   : > { %v997_v34 = vpop.f32.mrb[12].mxu0 }
 0x113   : > { %v1037_v35 = vpop.f32.mrb[12].mxu1  ;;  %v998_v36 = vpop.f32.mrb[13].mxu0 }
 0x114   : > { %v999_v37 = vadd.f32 %v998_v36, %v997_v34  ;;  %v1038_v38 = vpop.f32.mrb[13].mxu1  ;;  %v1000_v39 = vpop.f32.mrb[14].mxu0 }
 0x115   : > { %v1039_v40 = vadd.f32 %v1038_v38, %v1037_v35  ;;  %v1040_v41 = vpop.f32.mrb[14].mxu1  ;;  %v1001_v42 = vpop.f32.mrb[15].mxu0 }
 0x116   : > { %v1002_v43 = vadd.f32 %v1001_v42, %v1000_v39  ;;  %v1041_v44 = vpop.f32.mrb[15].mxu1 }
 0x117   : > { %v1042_v45 = vadd.f32 %v1041_v44, %v1040_v41  ;;  %v721_v46 = vadd.f32 %v1039_v40, %v999_v37 }
 0x119   : > { %v724_v47 = vadd.f32 %v1042_v45, %v1002_v43 }
 0x11a   : > { %v1061_v48 = vpop.f32.mrb[16].mxu0 }
 0x11b   : > { %v770_v50 = vadd.f32 %v1061_v48, %v705_v18  ;;  %v1065_v51 = vpop.f32.mrb[16].mxu1  ;;  %v761_v52 = vpop.f32.mrb[17].mxu0 }
 0x11c   : > { %v786_v53 = vadd.f32 %v1065_v51, %v721_v46  ;;  %v762_v54 = vadd.f32 %v761_v52, %v697_v4  ;;  %v777_v55 = vpop.f32.mrb[17].mxu1  ;;  %v1062_v56 = vpop.f32.mrb[18].mxu0 }
 0x11d   : > { %v803_v57 = vadd.f32 %v955_v49, %v770_v50  ;;  %v778_v58 = vadd.f32 %v777_v55, %v713_v32  ;;  %v773_v59 = vadd.f32 %v1062_v56, %v708_v19  ;;  %v1066_v60 = vpop.f32.mrb[18].mxu1  ;;  %v764_v61 = vpop.f32.mrb[19].mxu0 }
 0x11e   : > { %v799_v62 = vadd.f32 %v955_v49, %v762_v54  ;;  %v789_v63 = vadd.f32 %v1066_v60, %v724_v47  ;;  %v765_v0 = vadd.f32 %v764_v61, %v700_v5  ;;  %v780_v1 = vpop.f32.mrb[19].mxu1  ;;  %v815_v8 = vadd.f32 %v955_v49, %v786_v53 }
 0x11f   : > { %v805_v2 = vmax.f32 %v803_v57, 0.0  ;;  %v809_v3 = vadd.f32 %v955_v49, %v778_v58  ;;  %v804_v6 = vadd.f32 %v955_v49, %v773_v59  ;;  %v781_v7 = vadd.f32 %v780_v1, %v716_v33 }
 0x120   : > { %v801_v9 = vmax.f32 %v799_v62, 0.0  ;;  %v800_v10 = vadd.f32 %v955_v49, %v765_v0  ;;  %v816_v14 = vadd.f32 %v955_v49, %v789_v63  ;;  %v817_v16 = vmax.f32 %v815_v8, 0.0 }
 0x121   : > { %v806_v4 = vmax.f32 %v804_v6, 0.0  ;;  %v810_v11 = vadd.f32 %v955_v49, %v781_v7  ;;  %v811_v13 = vmax.f32 %v809_v3, 0.0 }
 0x122   : > { %v807_v12 = vmax.f32 %v801_v9, %v805_v2  ;;  %v802_v15 = vmax.f32 %v800_v10, 0.0  ;;  %v818_v20 = vmax.f32 %v816_v14, 0.0 }
 0x123   : > { %v812_v5 = vmax.f32 %v810_v11, 0.0 }
 0x124   : > { %v813_v17 = vmax.f32 %v807_v12, %v811_v13  ;;  %v808_v18 = vmax.f32 %v802_v15, %v806_v4 }
 0x126   : > { %v819_v19 = vmax.f32 %v813_v17, %v817_v16  ;;  %v814_v21 = vmax.f32 %v808_v18, %v812_v5 }
 0x128   : > { %v961_v22 = vpack.c.bf16 %v819_v19, %v819_v19  ;;  %v820_v23 = vmax.f32 %v814_v21, %v818_v20 }
 0x12a   : > { %830 = vst.msk [vmem:[%s170_s20] sm:$0xf] %vm829_vm1, %v961_v22  ;;  %v962_v24 = vpack.c.bf16 %v820_v23, %v820_v23 }
 0x12c   : > { %831 = vst.msk [vmem:[%s170_s20 + $0x4] sm:$0xf] %vm829_vm1, %v962_v24 }
 0x12d PF: > { %s13_s12 = sadd.s32 1, %s1154_s12  }
 0x12e   : > { %p10_p4 = scmp.ge.s32.totalorder %s13_s12, 4  }
 0x130   :  { %12 = sbr.rel (!%p10_p4) target bundleno = 1 (0x1), region = 62 }

</bundles_post_ra>
